<compile_context>
chip_gen: v7x
topology: tpu7x:2x2x1
jax: 0.10.0
libtpu: 0.0.40
codegen_flags: <defaults>
</compile_context>

<pallas_src>
import functools

import jax
import jax.numpy as jnp
from jax import lax
from jax.experimental import pallas as pl
from jax.experimental.pallas import tpu as pltpu

LANE = 128


def _round_up(n, m):
    return ((n + m - 1) // m) * m


def _sigmoid_via_tanh(x):
    # sigmoid(x) == 0.5 * tanh(0.5 * x) + 0.5  -> 1 EUP op + 2 VPU ops
    return 0.5 * jnp.tanh(0.5 * x) + 0.5


def lstm_tagger_kernel(x_ref, wih_ref, whh_ref, b_ref, wout_ref, bout_ref,
                       out_ref):
    """Whole forward pass (recurrence + projection + log_softmax) in-kernel.

    x_ref    : (T, D)     f32   input sequence
    wih_ref  : (D, 4*Hp)  bf16  input->gates weight (transposed, gate-blocked, padded)
    whh_ref  : (Hp, 4*Hp) bf16  hidden->gates weight (transposed, gate-blocked, padded)
    b_ref    : (1, 4*Hp)  f32   combined bias (b_ih + b_hh), zero in padded slots
    wout_ref : (Hp, Cp)   bf16  hidden2tag weight (transposed, padded)
    bout_ref : (1, Cp)    f32   hidden2tag bias; padded tag columns hold -1e30
    out_ref  : (T, Cp)    f32   log-softmax tag scores (padded tag dim)
    """
    T = x_ref.shape[0]
    Hp = whh_ref.shape[0]
    bf16 = jnp.bfloat16

    # --- prologue: time-independent input projection, one MXU matmul ---------
    xg = (jnp.dot(x_ref[...].astype(bf16), wih_ref[...],
                  preferred_element_type=jnp.float32)
          + b_ref[...])                                            # (T, 4Hp) f32

    # Hoist the loop-invariant row extraction (XLU sublane selects) off the
    # serial recurrence chain.
    xg_rows = [xg[t:t + 1, :] for t in range(T)]

    # Loop-invariant recurrent weight, read from VMEM once.
    whh = whh_ref[...]                                             # (Hp, 4Hp) bf16

    # --- recurrence: h/c live in vregs; static T loop fully unrolled ---------
    h = jnp.zeros((1, Hp), jnp.float32)
    c = jnp.zeros((1, Hp), jnp.float32)
    hs = []
    for t in range(T):                       # compile-time constant trip count
        gates = xg_rows[t] + jnp.dot(h.astype(bf16), whh,
                                     preferred_element_type=jnp.float32)
        # PyTorch gate order [i, f, g, o]; each slice is a full 128-lane block.
        i_g = _sigmoid_via_tanh(gates[:, 0 * Hp:1 * Hp])
        f_g = _sigmoid_via_tanh(gates[:, 1 * Hp:2 * Hp])
        g_g = jnp.tanh(gates[:, 2 * Hp:3 * Hp])
        o_g = _sigmoid_via_tanh(gates[:, 3 * Hp:4 * Hp])
        c = f_g * c + i_g * g_g
        h = o_g * jnp.tanh(c)
        hs.append(h)                         # stays in registers (off chain)

    # --- epilogue: one matmul + bias, one log_softmax, one lane-dense store --
    hs_all = jnp.concatenate(hs, axis=0)                           # (T, Hp) f32
    tag = (jnp.dot(hs_all.astype(bf16), wout_ref[...],
                   preferred_element_type=jnp.float32)
           + bout_ref[...])                                        # (T, Cp)
    m = jnp.max(tag, axis=-1, keepdims=True)
    s = tag - m
    lse = jnp.log(jnp.sum(jnp.exp(s), axis=-1, keepdims=True))
    out_ref[...] = s - lse


def pack_params(params):
    """One-time (init-time) packing: gate-blocked, lane-padded, pre-transposed
    bf16 weights + f32 biases. Keeps the per-call path free of XLA glue."""
    w_ih, w_hh, b_ih, b_hh, w_out, b_out = (
        params["w_ih"], params["w_hh"], params["b_ih"], params["b_hh"],
        params["w_out"], params["b_out"])
    H = w_hh.shape[1]
    D = w_ih.shape[1]
    C = w_out.shape[0]
    Hp = _round_up(H, LANE)
    Cp = _round_up(C, LANE)
    f32, bf16 = jnp.float32, jnp.bfloat16

    # Gate g occupies columns [g*Hp, g*Hp + H); padded rows/columns are exactly
    # zero (and stay exactly zero under the bf16 cast), so padded hidden units
    # remain 0 throughout the recurrence.
    bsum = (b_ih + b_hh).astype(f32)
    wih_t = jnp.zeros((D, 4 * Hp), f32)
    whh_t = jnp.zeros((Hp, 4 * Hp), f32)
    b = jnp.zeros((1, 4 * Hp), f32)
    for g in range(4):
        wih_t = wih_t.at[:, g * Hp:g * Hp + H].set(
            w_ih[g * H:(g + 1) * H, :].astype(f32).T)
        whh_t = whh_t.at[:H, g * Hp:g * Hp + H].set(
            w_hh[g * H:(g + 1) * H, :].astype(f32).T)
        b = b.at[:, g * Hp:g * Hp + H].set(bsum[g * H:(g + 1) * H][None, :])

    wout_t = jnp.zeros((Hp, Cp), f32).at[:H, :C].set(w_out.astype(f32).T)
    # Padded tag columns get a huge negative bias (added in f32 after the MXU):
    # exp() underflows to exactly 0, so log_softmax over Cp == over the real C.
    bout = jnp.full((1, Cp), -1e30, f32).at[:, :C].set(
        b_out.astype(f32)[None, :])

    return {
        "wih": wih_t.astype(bf16),
        "whh": whh_t.astype(bf16),
        "b": b,
        "wout": wout_t.astype(bf16),
        "bout": bout,
    }


@functools.partial(jax.jit, static_argnames=("tagset_size",))
def lstm_tagger_forward(record, packed, *, tagset_size):
    """record: (T, D) float32, packed: pack_params(...) -> (T, C) log-probs."""
    T, D = record.shape
    Hp = packed["whh"].shape[0]
    Cp = packed["wout"].shape[1]
    f32 = jnp.float32

    flops = (2 * T * D * 4 * Hp          # input projection
             + T * 2 * Hp * 4 * Hp       # recurrent projections
             + 2 * T * Hp * Cp)          # tag projection
    transcendentals = T * (5 * Hp + Cp)  # 4 tanh-class gate ops + tanh(c) + exp
    bytes_accessed = (4 * (record.size + packed["b"].size + packed["bout"].size
                           + T * Cp)
                      + 2 * (packed["wih"].size + packed["whh"].size
                             + packed["wout"].size))

    vmem = pl.BlockSpec(memory_space=pltpu.MemorySpace.VMEM)
    out_padded = pl.pallas_call(
        lstm_tagger_kernel,
        out_shape=jax.ShapeDtypeStruct((T, Cp), f32),
        in_specs=[vmem] * 6,
        out_specs=vmem,
        cost_estimate=pl.CostEstimate(flops=flops,
                                      transcendentals=transcendentals,
                                      bytes_accessed=bytes_accessed),
    )(record.astype(f32), packed["wih"], packed["whh"], packed["b"],
      packed["wout"], packed["bout"])
    return out_padded[:, :tagset_size]


def _reference_forward(record, params):
    """Pure-JAX f32 reference mirroring torch.nn.LSTM + Linear + log_softmax."""
    w_ih, w_hh, b_ih, b_hh = (params["w_ih"], params["w_hh"],
                              params["b_ih"], params["b_hh"])
    w_out, b_out = params["w_out"], params["b_out"]
    H = w_hh.shape[1]

    def step(carry, x_t):
        h, c = carry
        gates = x_t @ w_ih.T + b_ih + h @ w_hh.T + b_hh
        i = jax.nn.sigmoid(gates[0:H])
        f = jax.nn.sigmoid(gates[H:2 * H])
        g = jnp.tanh(gates[2 * H:3 * H])
        o = jax.nn.sigmoid(gates[3 * H:4 * H])
        c = f * c + i * g
        h = o * jnp.tanh(c)
        return (h, c), h

    h0 = jnp.zeros((H,), jnp.float32)
    c0 = jnp.zeros((H,), jnp.float32)
    _, hs = lax.scan(step, (h0, c0), record)
    tag_space = hs @ w_out.T + b_out
    return jax.nn.log_softmax(tag_space, axis=1)


def init_params(key, input_dim, hidden_dim, tagset_size):
    """Deterministic init matching PyTorch default shapes (uniform +-1/sqrt(H))."""
    k = 1.0 / jnp.sqrt(jnp.float32(hidden_dim))
    keys = jax.random.split(key, 6)
    u = lambda kk, shape: jax.random.uniform(kk, shape, jnp.float32, -k, k)
    return {
        "w_ih": u(keys[0], (4 * hidden_dim, input_dim)),
        "w_hh": u(keys[1], (4 * hidden_dim, hidden_dim)),
        "b_ih": u(keys[2], (4 * hidden_dim,)),
        "b_hh": u(keys[3], (4 * hidden_dim,)),
        "w_out": u(keys[4], (tagset_size, hidden_dim)),
        "b_out": u(keys[5], (tagset_size,)),
    }


if __name__ == "__main__":
    SEQ_LEN, INPUT_DIM, HIDDEN_DIM, TAGSET_SIZE = 8, 16, 32, 8

    key = jax.random.PRNGKey(0)
    pkey, xkey = jax.random.split(key)
    params = init_params(pkey, INPUT_DIM, HIDDEN_DIM, TAGSET_SIZE)
    record = jax.random.normal(xkey, (SEQ_LEN, INPUT_DIM), jnp.float32)

    packed = pack_params(params)          # one-time, off the per-call path
    packed = jax.tree_util.tree_map(jax.block_until_ready, packed)

    out = lstm_tagger_forward(record, packed, tagset_size=TAGSET_SIZE)
    out = jax.block_until_ready(out)

    ref = jax.block_until_ready(_reference_forward(record, params))
    assert out.shape == (SEQ_LEN, TAGSET_SIZE)
    # bf16 MXU operands (f32 accumulation) vs. the pure-f32 reference:
    # tolerance relaxed from 1e-4 to 2e-2 per the review.
    assert jnp.allclose(out, ref, atol=2e-2, rtol=2e-2), "mismatch vs reference"

    print("KERNEL_OK")
</pallas_src>

<mosaic_0001>
module attributes {stable_mosaic.version = 11 : i64} {
  func.func @lstm_tagger_kernel(%arg0: memref<8x16xf32, #tpu.memory_space<vmem>>, %arg1: memref<16x512xbf16, #tpu.memory_space<vmem>>, %arg2: memref<128x512xbf16, #tpu.memory_space<vmem>>, %arg3: memref<1x512xf32, #tpu.memory_space<vmem>>, %arg4: memref<128x128xbf16, #tpu.memory_space<vmem>>, %arg5: memref<1x128xf32, #tpu.memory_space<vmem>>, %arg6: memref<8x128xf32, #tpu.memory_space<vmem>>) attributes {dimension_semantics = [], scalar_prefetch = 0 : i64, scratch_operands = 0 : i64, tpu.core_type = #tpu.core_type<tc>} {
    %c0 = arith.constant 0 : index
    %c0_0 = arith.constant 0 : index
    %0 = vector.load %arg0[%c0, %c0_0] : memref<8x16xf32, #tpu.memory_space<vmem>>, vector<8x16xf32>
    %1 = arith.truncf %0 : vector<8x16xf32> to vector<8x16xbf16>
    %c0_1 = arith.constant 0 : index
    %c0_2 = arith.constant 0 : index
    %2 = vector.load %arg1[%c0_1, %c0_2] : memref<16x512xbf16, #tpu.memory_space<vmem>>, vector<16x512xbf16>
    %cst = arith.constant dense<0.000000e+00> : vector<8x512xf32>
    %3 = tpu.matmul %1, %2, %cst {dimension_numbers = #tpu.dot_dimension_numbers<[1], [0], [0], [1], [0, 0, 1, 1], [], []>} : vector<8x16xbf16>, vector<16x512xbf16>, vector<8x512xf32> -> vector<8x512xf32>
    %c0_3 = arith.constant 0 : index
    %c0_4 = arith.constant 0 : index
    %4 = vector.load %arg3[%c0_3, %c0_4] : memref<1x512xf32, #tpu.memory_space<vmem>>, vector<1x512xf32>
    %5 = vector.broadcast %4 : vector<1x512xf32> to vector<8x512xf32>
    %6 = arith.addf %3, %5 : vector<8x512xf32>
    %7 = vector.extract_strided_slice %6 {offsets = [0, 0], sizes = [1, 512], strides = [1, 1]} : vector<8x512xf32> to vector<1x512xf32>
    %8 = vector.extract_strided_slice %6 {offsets = [1, 0], sizes = [1, 512], strides = [1, 1]} : vector<8x512xf32> to vector<1x512xf32>
    %9 = vector.extract_strided_slice %6 {offsets = [2, 0], sizes = [1, 512], strides = [1, 1]} : vector<8x512xf32> to vector<1x512xf32>
    %10 = vector.extract_strided_slice %6 {offsets = [3, 0], sizes = [1, 512], strides = [1, 1]} : vector<8x512xf32> to vector<1x512xf32>
    %11 = vector.extract_strided_slice %6 {offsets = [4, 0], sizes = [1, 512], strides = [1, 1]} : vector<8x512xf32> to vector<1x512xf32>
    %12 = vector.extract_strided_slice %6 {offsets = [5, 0], sizes = [1, 512], strides = [1, 1]} : vector<8x512xf32> to vector<1x512xf32>
    %13 = vector.extract_strided_slice %6 {offsets = [6, 0], sizes = [1, 512], strides = [1, 1]} : vector<8x512xf32> to vector<1x512xf32>
    %14 = vector.extract_strided_slice %6 {offsets = [7, 0], sizes = [1, 512], strides = [1, 1]} : vector<8x512xf32> to vector<1x512xf32>
    %c0_5 = arith.constant 0 : index
    %c0_6 = arith.constant 0 : index
    %15 = vector.load %arg2[%c0_5, %c0_6] : memref<128x512xbf16, #tpu.memory_space<vmem>>, vector<128x512xbf16>
    %cst_7 = arith.constant 0.000000e+00 : f32
    %16 = vector.broadcast %cst_7 : f32 to vector<1x128xf32>
    %cst_8 = arith.constant 0.000000e+00 : f32
    %17 = vector.broadcast %cst_8 : f32 to vector<1x128xf32>
    %18 = arith.truncf %16 : vector<1x128xf32> to vector<1x128xbf16>
    %cst_9 = arith.constant dense<0.000000e+00> : vector<1x512xf32>
    %19 = tpu.matmul %18, %15, %cst_9 {dimension_numbers = #tpu.dot_dimension_numbers<[1], [0], [0], [1], [0, 0, 1, 1], [], []>} : vector<1x128xbf16>, vector<128x512xbf16>, vector<1x512xf32> -> vector<1x512xf32>
    %20 = arith.addf %7, %19 : vector<1x512xf32>
    %21 = vector.extract_strided_slice %20 {offsets = [0, 0], sizes = [1, 128], strides = [1, 1]} : vector<1x512xf32> to vector<1x128xf32>
    %cst_10 = arith.constant 5.000000e-01 : f32
    %22 = vector.broadcast %cst_10 : f32 to vector<1x128xf32>
    %23 = arith.mulf %22, %21 : vector<1x128xf32>
    %24 = math.tanh %23 : vector<1x128xf32>
    %cst_11 = arith.constant 5.000000e-01 : f32
    %25 = vector.broadcast %cst_11 : f32 to vector<1x128xf32>
    %26 = arith.mulf %25, %24 : vector<1x128xf32>
    %cst_12 = arith.constant 5.000000e-01 : f32
    %27 = vector.broadcast %cst_12 : f32 to vector<1x128xf32>
    %28 = arith.addf %26, %27 : vector<1x128xf32>
    %29 = vector.extract_strided_slice %20 {offsets = [0, 128], sizes = [1, 128], strides = [1, 1]} : vector<1x512xf32> to vector<1x128xf32>
    %cst_13 = arith.constant 5.000000e-01 : f32
    %30 = vector.broadcast %cst_13 : f32 to vector<1x128xf32>
    %31 = arith.mulf %30, %29 : vector<1x128xf32>
    %32 = math.tanh %31 : vector<1x128xf32>
    %cst_14 = arith.constant 5.000000e-01 : f32
    %33 = vector.broadcast %cst_14 : f32 to vector<1x128xf32>
    %34 = arith.mulf %33, %32 : vector<1x128xf32>
    %cst_15 = arith.constant 5.000000e-01 : f32
    %35 = vector.broadcast %cst_15 : f32 to vector<1x128xf32>
    %36 = arith.addf %34, %35 : vector<1x128xf32>
    %37 = vector.extract_strided_slice %20 {offsets = [0, 256], sizes = [1, 128], strides = [1, 1]} : vector<1x512xf32> to vector<1x128xf32>
    %38 = math.tanh %37 : vector<1x128xf32>
    %39 = vector.extract_strided_slice %20 {offsets = [0, 384], sizes = [1, 128], strides = [1, 1]} : vector<1x512xf32> to vector<1x128xf32>
    %cst_16 = arith.constant 5.000000e-01 : f32
    %40 = vector.broadcast %cst_16 : f32 to vector<1x128xf32>
    %41 = arith.mulf %40, %39 : vector<1x128xf32>
    %42 = math.tanh %41 : vector<1x128xf32>
    %cst_17 = arith.constant 5.000000e-01 : f32
    %43 = vector.broadcast %cst_17 : f32 to vector<1x128xf32>
    %44 = arith.mulf %43, %42 : vector<1x128xf32>
    %cst_18 = arith.constant 5.000000e-01 : f32
    %45 = vector.broadcast %cst_18 : f32 to vector<1x128xf32>
    %46 = arith.addf %44, %45 : vector<1x128xf32>
    %47 = arith.mulf %36, %17 : vector<1x128xf32>
    %48 = arith.mulf %28, %38 : vector<1x128xf32>
    %49 = arith.addf %47, %48 : vector<1x128xf32>
    %50 = math.tanh %49 : vector<1x128xf32>
    %51 = arith.mulf %46, %50 : vector<1x128xf32>
    %52 = arith.truncf %51 : vector<1x128xf32> to vector<1x128xbf16>
    %cst_19 = arith.constant dense<0.000000e+00> : vector<1x512xf32>
    %53 = tpu.matmul %52, %15, %cst_19 {dimension_numbers = #tpu.dot_dimension_numbers<[1], [0], [0], [1], [0, 0, 1, 1], [], []>} : vector<1x128xbf16>, vector<128x512xbf16>, vector<1x512xf32> -> vector<1x512xf32>
    %54 = arith.addf %8, %53 : vector<1x512xf32>
    %55 = vector.extract_strided_slice %54 {offsets = [0, 0], sizes = [1, 128], strides = [1, 1]} : vector<1x512xf32> to vector<1x128xf32>
    %cst_20 = arith.constant 5.000000e-01 : f32
    %56 = vector.broadcast %cst_20 : f32 to vector<1x128xf32>
    %57 = arith.mulf %56, %55 : vector<1x128xf32>
    %58 = math.tanh %57 : vector<1x128xf32>
    %cst_21 = arith.constant 5.000000e-01 : f32
    %59 = vector.broadcast %cst_21 : f32 to vector<1x128xf32>
    %60 = arith.mulf %59, %58 : vector<1x128xf32>
    %cst_22 = arith.constant 5.000000e-01 : f32
    %61 = vector.broadcast %cst_22 : f32 to vector<1x128xf32>
    %62 = arith.addf %60, %61 : vector<1x128xf32>
    %63 = vector.extract_strided_slice %54 {offsets = [0, 128], sizes = [1, 128], strides = [1, 1]} : vector<1x512xf32> to vector<1x128xf32>
    %cst_23 = arith.constant 5.000000e-01 : f32
    %64 = vector.broadcast %cst_23 : f32 to vector<1x128xf32>
    %65 = arith.mulf %64, %63 : vector<1x128xf32>
    %66 = math.tanh %65 : vector<1x128xf32>
    %cst_24 = arith.constant 5.000000e-01 : f32
    %67 = vector.broadcast %cst_24 : f32 to vector<1x128xf32>
    %68 = arith.mulf %67, %66 : vector<1x128xf32>
    %cst_25 = arith.constant 5.000000e-01 : f32
    %69 = vector.broadcast %cst_25 : f32 to vector<1x128xf32>
    %70 = arith.addf %68, %69 : vector<1x128xf32>
    %71 = vector.extract_strided_slice %54 {offsets = [0, 256], sizes = [1, 128], strides = [1, 1]} : vector<1x512xf32> to vector<1x128xf32>
    %72 = math.tanh %71 : vector<1x128xf32>
    %73 = vector.extract_strided_slice %54 {offsets = [0, 384], sizes = [1, 128], strides = [1, 1]} : vector<1x512xf32> to vector<1x128xf32>
    %cst_26 = arith.constant 5.000000e-01 : f32
    %74 = vector.broadcast %cst_26 : f32 to vector<1x128xf32>
    %75 = arith.mulf %74, %73 : vector<1x128xf32>
    %76 = math.tanh %75 : vector<1x128xf32>
    %cst_27 = arith.constant 5.000000e-01 : f32
    %77 = vector.broadcast %cst_27 : f32 to vector<1x128xf32>
    %78 = arith.mulf %77, %76 : vector<1x128xf32>
    %cst_28 = arith.constant 5.000000e-01 : f32
    %79 = vector.broadcast %cst_28 : f32 to vector<1x128xf32>
    %80 = arith.addf %78, %79 : vector<1x128xf32>
    %81 = arith.mulf %70, %49 : vector<1x128xf32>
    %82 = arith.mulf %62, %72 : vector<1x128xf32>
    %83 = arith.addf %81, %82 : vector<1x128xf32>
    %84 = math.tanh %83 : vector<1x128xf32>
    %85 = arith.mulf %80, %84 : vector<1x128xf32>
    %86 = arith.truncf %85 : vector<1x128xf32> to vector<1x128xbf16>
    %cst_29 = arith.constant dense<0.000000e+00> : vector<1x512xf32>
    %87 = tpu.matmul %86, %15, %cst_29 {dimension_numbers = #tpu.dot_dimension_numbers<[1], [0], [0], [1], [0, 0, 1, 1], [], []>} : vector<1x128xbf16>, vector<128x512xbf16>, vector<1x512xf32> -> vector<1x512xf32>
    %88 = arith.addf %9, %87 : vector<1x512xf32>
    %89 = vector.extract_strided_slice %88 {offsets = [0, 0], sizes = [1, 128], strides = [1, 1]} : vector<1x512xf32> to vector<1x128xf32>
    %cst_30 = arith.constant 5.000000e-01 : f32
    %90 = vector.broadcast %cst_30 : f32 to vector<1x128xf32>
    %91 = arith.mulf %90, %89 : vector<1x128xf32>
    %92 = math.tanh %91 : vector<1x128xf32>
    %cst_31 = arith.constant 5.000000e-01 : f32
    %93 = vector.broadcast %cst_31 : f32 to vector<1x128xf32>
    %94 = arith.mulf %93, %92 : vector<1x128xf32>
    %cst_32 = arith.constant 5.000000e-01 : f32
    %95 = vector.broadcast %cst_32 : f32 to vector<1x128xf32>
    %96 = arith.addf %94, %95 : vector<1x128xf32>
    %97 = vector.extract_strided_slice %88 {offsets = [0, 128], sizes = [1, 128], strides = [1, 1]} : vector<1x512xf32> to vector<1x128xf32>
    %cst_33 = arith.constant 5.000000e-01 : f32
    %98 = vector.broadcast %cst_33 : f32 to vector<1x128xf32>
    %99 = arith.mulf %98, %97 : vector<1x128xf32>
    %100 = math.tanh %99 : vector<1x128xf32>
    %cst_34 = arith.constant 5.000000e-01 : f32
    %101 = vector.broadcast %cst_34 : f32 to vector<1x128xf32>
    %102 = arith.mulf %101, %100 : vector<1x128xf32>
    %cst_35 = arith.constant 5.000000e-01 : f32
    %103 = vector.broadcast %cst_35 : f32 to vector<1x128xf32>
    %104 = arith.addf %102, %103 : vector<1x128xf32>
    %105 = vector.extract_strided_slice %88 {offsets = [0, 256], sizes = [1, 128], strides = [1, 1]} : vector<1x512xf32> to vector<1x128xf32>
    %106 = math.tanh %105 : vector<1x128xf32>
    %107 = vector.extract_strided_slice %88 {offsets = [0, 384], sizes = [1, 128], strides = [1, 1]} : vector<1x512xf32> to vector<1x128xf32>
    %cst_36 = arith.constant 5.000000e-01 : f32
    %108 = vector.broadcast %cst_36 : f32 to vector<1x128xf32>
    %109 = arith.mulf %108, %107 : vector<1x128xf32>
    %110 = math.tanh %109 : vector<1x128xf32>
    %cst_37 = arith.constant 5.000000e-01 : f32
    %111 = vector.broadcast %cst_37 : f32 to vector<1x128xf32>
    %112 = arith.mulf %111, %110 : vector<1x128xf32>
    %cst_38 = arith.constant 5.000000e-01 : f32
    %113 = vector.broadcast %cst_38 : f32 to vector<1x128xf32>
    %114 = arith.addf %112, %113 : vector<1x128xf32>
    %115 = arith.mulf %104, %83 : vector<1x128xf32>
    %116 = arith.mulf %96, %106 : vector<1x128xf32>
    %117 = arith.addf %115, %116 : vector<1x128xf32>
    %118 = math.tanh %117 : vector<1x128xf32>
    %119 = arith.mulf %114, %118 : vector<1x128xf32>
    %120 = arith.truncf %119 : vector<1x128xf32> to vector<1x128xbf16>
    %cst_39 = arith.constant dense<0.000000e+00> : vector<1x512xf32>
    %121 = tpu.matmul %120, %15, %cst_39 {dimension_numbers = #tpu.dot_dimension_numbers<[1], [0], [0], [1], [0, 0, 1, 1], [], []>} : vector<1x128xbf16>, vector<128x512xbf16>, vector<1x512xf32> -> vector<1x512xf32>
    %122 = arith.addf %10, %121 : vector<1x512xf32>
    %123 = vector.extract_strided_slice %122 {offsets = [0, 0], sizes = [1, 128], strides = [1, 1]} : vector<1x512xf32> to vector<1x128xf32>
    %cst_40 = arith.constant 5.000000e-01 : f32
    %124 = vector.broadcast %cst_40 : f32 to vector<1x128xf32>
    %125 = arith.mulf %124, %123 : vector<1x128xf32>
    %126 = math.tanh %125 : vector<1x128xf32>
    %cst_41 = arith.constant 5.000000e-01 : f32
    %127 = vector.broadcast %cst_41 : f32 to vector<1x128xf32>
    %128 = arith.mulf %127, %126 : vector<1x128xf32>
    %cst_42 = arith.constant 5.000000e-01 : f32
    %129 = vector.broadcast %cst_42 : f32 to vector<1x128xf32>
    %130 = arith.addf %128, %129 : vector<1x128xf32>
    %131 = vector.extract_strided_slice %122 {offsets = [0, 128], sizes = [1, 128], strides = [1, 1]} : vector<1x512xf32> to vector<1x128xf32>
    %cst_43 = arith.constant 5.000000e-01 : f32
    %132 = vector.broadcast %cst_43 : f32 to vector<1x128xf32>
    %133 = arith.mulf %132, %131 : vector<1x128xf32>
    %134 = math.tanh %133 : vector<1x128xf32>
    %cst_44 = arith.constant 5.000000e-01 : f32
    %135 = vector.broadcast %cst_44 : f32 to vector<1x128xf32>
    %136 = arith.mulf %135, %134 : vector<1x128xf32>
    %cst_45 = arith.constant 5.000000e-01 : f32
    %137 = vector.broadcast %cst_45 : f32 to vector<1x128xf32>
    %138 = arith.addf %136, %137 : vector<1x128xf32>
    %139 = vector.extract_strided_slice %122 {offsets = [0, 256], sizes = [1, 128], strides = [1, 1]} : vector<1x512xf32> to vector<1x128xf32>
    %140 = math.tanh %139 : vector<1x128xf32>
    %141 = vector.extract_strided_slice %122 {offsets = [0, 384], sizes = [1, 128], strides = [1, 1]} : vector<1x512xf32> to vector<1x128xf32>
    %cst_46 = arith.constant 5.000000e-01 : f32
    %142 = vector.broadcast %cst_46 : f32 to vector<1x128xf32>
    %143 = arith.mulf %142, %141 : vector<1x128xf32>
    %144 = math.tanh %143 : vector<1x128xf32>
    %cst_47 = arith.constant 5.000000e-01 : f32
    %145 = vector.broadcast %cst_47 : f32 to vector<1x128xf32>
    %146 = arith.mulf %145, %144 : vector<1x128xf32>
    %cst_48 = arith.constant 5.000000e-01 : f32
    %147 = vector.broadcast %cst_48 : f32 to vector<1x128xf32>
    %148 = arith.addf %146, %147 : vector<1x128xf32>
    %149 = arith.mulf %138, %117 : vector<1x128xf32>
    %150 = arith.mulf %130, %140 : vector<1x128xf32>
    %151 = arith.addf %149, %150 : vector<1x128xf32>
    %152 = math.tanh %151 : vector<1x128xf32>
    %153 = arith.mulf %148, %152 : vector<1x128xf32>
    %154 = arith.truncf %153 : vector<1x128xf32> to vector<1x128xbf16>
    %cst_49 = arith.constant dense<0.000000e+00> : vector<1x512xf32>
    %155 = tpu.matmul %154, %15, %cst_49 {dimension_numbers = #tpu.dot_dimension_numbers<[1], [0], [0], [1], [0, 0, 1, 1], [], []>} : vector<1x128xbf16>, vector<128x512xbf16>, vector<1x512xf32> -> vector<1x512xf32>
    %156 = arith.addf %11, %155 : vector<1x512xf32>
    %157 = vector.extract_strided_slice %156 {offsets = [0, 0], sizes = [1, 128], strides = [1, 1]} : vector<1x512xf32> to vector<1x128xf32>
    %cst_50 = arith.constant 5.000000e-01 : f32
    %158 = vector.broadcast %cst_50 : f32 to vector<1x128xf32>
    %159 = arith.mulf %158, %157 : vector<1x128xf32>
    %160 = math.tanh %159 : vector<1x128xf32>
    %cst_51 = arith.constant 5.000000e-01 : f32
    %161 = vector.broadcast %cst_51 : f32 to vector<1x128xf32>
    %162 = arith.mulf %161, %160 : vector<1x128xf32>
    %cst_52 = arith.constant 5.000000e-01 : f32
    %163 = vector.broadcast %cst_52 : f32 to vector<1x128xf32>
    %164 = arith.addf %162, %163 : vector<1x128xf32>
    %165 = vector.extract_strided_slice %156 {offsets = [0, 128], sizes = [1, 128], strides = [1, 1]} : vector<1x512xf32> to vector<1x128xf32>
    %cst_53 = arith.constant 5.000000e-01 : f32
    %166 = vector.broadcast %cst_53 : f32 to vector<1x128xf32>
    %167 = arith.mulf %166, %165 : vector<1x128xf32>
    %168 = math.tanh %167 : vector<1x128xf32>
    %cst_54 = arith.constant 5.000000e-01 : f32
    %169 = vector.broadcast %cst_54 : f32 to vector<1x128xf32>
    %170 = arith.mulf %169, %168 : vector<1x128xf32>
    %cst_55 = arith.constant 5.000000e-01 : f32
    %171 = vector.broadcast %cst_55 : f32 to vector<1x128xf32>
    %172 = arith.addf %170, %171 : vector<1x128xf32>
    %173 = vector.extract_strided_slice %156 {offsets = [0, 256], sizes = [1, 128], strides = [1, 1]} : vector<1x512xf32> to vector<1x128xf32>
    %174 = math.tanh %173 : vector<1x128xf32>
    %175 = vector.extract_strided_slice %156 {offsets = [0, 384], sizes = [1, 128], strides = [1, 1]} : vector<1x512xf32> to vector<1x128xf32>
    %cst_56 = arith.constant 5.000000e-01 : f32
    %176 = vector.broadcast %cst_56 : f32 to vector<1x128xf32>
    %177 = arith.mulf %176, %175 : vector<1x128xf32>
    %178 = math.tanh %177 : vector<1x128xf32>
    %cst_57 = arith.constant 5.000000e-01 : f32
    %179 = vector.broadcast %cst_57 : f32 to vector<1x128xf32>
    %180 = arith.mulf %179, %178 : vector<1x128xf32>
    %cst_58 = arith.constant 5.000000e-01 : f32
    %181 = vector.broadcast %cst_58 : f32 to vector<1x128xf32>
    %182 = arith.addf %180, %181 : vector<1x128xf32>
    %183 = arith.mulf %172, %151 : vector<1x128xf32>
    %184 = arith.mulf %164, %174 : vector<1x128xf32>
    %185 = arith.addf %183, %184 : vector<1x128xf32>
    %186 = math.tanh %185 : vector<1x128xf32>
    %187 = arith.mulf %182, %186 : vector<1x128xf32>
    %188 = arith.truncf %187 : vector<1x128xf32> to vector<1x128xbf16>
    %cst_59 = arith.constant dense<0.000000e+00> : vector<1x512xf32>
    %189 = tpu.matmul %188, %15, %cst_59 {dimension_numbers = #tpu.dot_dimension_numbers<[1], [0], [0], [1], [0, 0, 1, 1], [], []>} : vector<1x128xbf16>, vector<128x512xbf16>, vector<1x512xf32> -> vector<1x512xf32>
    %190 = arith.addf %12, %189 : vector<1x512xf32>
    %191 = vector.extract_strided_slice %190 {offsets = [0, 0], sizes = [1, 128], strides = [1, 1]} : vector<1x512xf32> to vector<1x128xf32>
    %cst_60 = arith.constant 5.000000e-01 : f32
    %192 = vector.broadcast %cst_60 : f32 to vector<1x128xf32>
    %193 = arith.mulf %192, %191 : vector<1x128xf32>
    %194 = math.tanh %193 : vector<1x128xf32>
    %cst_61 = arith.constant 5.000000e-01 : f32
    %195 = vector.broadcast %cst_61 : f32 to vector<1x128xf32>
    %196 = arith.mulf %195, %194 : vector<1x128xf32>
    %cst_62 = arith.constant 5.000000e-01 : f32
    %197 = vector.broadcast %cst_62 : f32 to vector<1x128xf32>
    %198 = arith.addf %196, %197 : vector<1x128xf32>
    %199 = vector.extract_strided_slice %190 {offsets = [0, 128], sizes = [1, 128], strides = [1, 1]} : vector<1x512xf32> to vector<1x128xf32>
    %cst_63 = arith.constant 5.000000e-01 : f32
    %200 = vector.broadcast %cst_63 : f32 to vector<1x128xf32>
    %201 = arith.mulf %200, %199 : vector<1x128xf32>
    %202 = math.tanh %201 : vector<1x128xf32>
    %cst_64 = arith.constant 5.000000e-01 : f32
    %203 = vector.broadcast %cst_64 : f32 to vector<1x128xf32>
    %204 = arith.mulf %203, %202 : vector<1x128xf32>
    %cst_65 = arith.constant 5.000000e-01 : f32
    %205 = vector.broadcast %cst_65 : f32 to vector<1x128xf32>
    %206 = arith.addf %204, %205 : vector<1x128xf32>
    %207 = vector.extract_strided_slice %190 {offsets = [0, 256], sizes = [1, 128], strides = [1, 1]} : vector<1x512xf32> to vector<1x128xf32>
    %208 = math.tanh %207 : vector<1x128xf32>
    %209 = vector.extract_strided_slice %190 {offsets = [0, 384], sizes = [1, 128], strides = [1, 1]} : vector<1x512xf32> to vector<1x128xf32>
    %cst_66 = arith.constant 5.000000e-01 : f32
    %210 = vector.broadcast %cst_66 : f32 to vector<1x128xf32>
    %211 = arith.mulf %210, %209 : vector<1x128xf32>
    %212 = math.tanh %211 : vector<1x128xf32>
    %cst_67 = arith.constant 5.000000e-01 : f32
    %213 = vector.broadcast %cst_67 : f32 to vector<1x128xf32>
    %214 = arith.mulf %213, %212 : vector<1x128xf32>
    %cst_68 = arith.constant 5.000000e-01 : f32
    %215 = vector.broadcast %cst_68 : f32 to vector<1x128xf32>
    %216 = arith.addf %214, %215 : vector<1x128xf32>
    %217 = arith.mulf %206, %185 : vector<1x128xf32>
    %218 = arith.mulf %198, %208 : vector<1x128xf32>
    %219 = arith.addf %217, %218 : vector<1x128xf32>
    %220 = math.tanh %219 : vector<1x128xf32>
    %221 = arith.mulf %216, %220 : vector<1x128xf32>
    %222 = arith.truncf %221 : vector<1x128xf32> to vector<1x128xbf16>
    %cst_69 = arith.constant dense<0.000000e+00> : vector<1x512xf32>
    %223 = tpu.matmul %222, %15, %cst_69 {dimension_numbers = #tpu.dot_dimension_numbers<[1], [0], [0], [1], [0, 0, 1, 1], [], []>} : vector<1x128xbf16>, vector<128x512xbf16>, vector<1x512xf32> -> vector<1x512xf32>
    %224 = arith.addf %13, %223 : vector<1x512xf32>
    %225 = vector.extract_strided_slice %224 {offsets = [0, 0], sizes = [1, 128], strides = [1, 1]} : vector<1x512xf32> to vector<1x128xf32>
    %cst_70 = arith.constant 5.000000e-01 : f32
    %226 = vector.broadcast %cst_70 : f32 to vector<1x128xf32>
    %227 = arith.mulf %226, %225 : vector<1x128xf32>
    %228 = math.tanh %227 : vector<1x128xf32>
    %cst_71 = arith.constant 5.000000e-01 : f32
    %229 = vector.broadcast %cst_71 : f32 to vector<1x128xf32>
    %230 = arith.mulf %229, %228 : vector<1x128xf32>
    %cst_72 = arith.constant 5.000000e-01 : f32
    %231 = vector.broadcast %cst_72 : f32 to vector<1x128xf32>
    %232 = arith.addf %230, %231 : vector<1x128xf32>
    %233 = vector.extract_strided_slice %224 {offsets = [0, 128], sizes = [1, 128], strides = [1, 1]} : vector<1x512xf32> to vector<1x128xf32>
    %cst_73 = arith.constant 5.000000e-01 : f32
    %234 = vector.broadcast %cst_73 : f32 to vector<1x128xf32>
    %235 = arith.mulf %234, %233 : vector<1x128xf32>
    %236 = math.tanh %235 : vector<1x128xf32>
    %cst_74 = arith.constant 5.000000e-01 : f32
    %237 = vector.broadcast %cst_74 : f32 to vector<1x128xf32>
    %238 = arith.mulf %237, %236 : vector<1x128xf32>
    %cst_75 = arith.constant 5.000000e-01 : f32
    %239 = vector.broadcast %cst_75 : f32 to vector<1x128xf32>
    %240 = arith.addf %238, %239 : vector<1x128xf32>
    %241 = vector.extract_strided_slice %224 {offsets = [0, 256], sizes = [1, 128], strides = [1, 1]} : vector<1x512xf32> to vector<1x128xf32>
    %242 = math.tanh %241 : vector<1x128xf32>
    %243 = vector.extract_strided_slice %224 {offsets = [0, 384], sizes = [1, 128], strides = [1, 1]} : vector<1x512xf32> to vector<1x128xf32>
    %cst_76 = arith.constant 5.000000e-01 : f32
    %244 = vector.broadcast %cst_76 : f32 to vector<1x128xf32>
    %245 = arith.mulf %244, %243 : vector<1x128xf32>
    %246 = math.tanh %245 : vector<1x128xf32>
    %cst_77 = arith.constant 5.000000e-01 : f32
    %247 = vector.broadcast %cst_77 : f32 to vector<1x128xf32>
    %248 = arith.mulf %247, %246 : vector<1x128xf32>
    %cst_78 = arith.constant 5.000000e-01 : f32
    %249 = vector.broadcast %cst_78 : f32 to vector<1x128xf32>
    %250 = arith.addf %248, %249 : vector<1x128xf32>
    %251 = arith.mulf %240, %219 : vector<1x128xf32>
    %252 = arith.mulf %232, %242 : vector<1x128xf32>
    %253 = arith.addf %251, %252 : vector<1x128xf32>
    %254 = math.tanh %253 : vector<1x128xf32>
    %255 = arith.mulf %250, %254 : vector<1x128xf32>
    %256 = arith.truncf %255 : vector<1x128xf32> to vector<1x128xbf16>
    %cst_79 = arith.constant dense<0.000000e+00> : vector<1x512xf32>
    %257 = tpu.matmul %256, %15, %cst_79 {dimension_numbers = #tpu.dot_dimension_numbers<[1], [0], [0], [1], [0, 0, 1, 1], [], []>} : vector<1x128xbf16>, vector<128x512xbf16>, vector<1x512xf32> -> vector<1x512xf32>
    %258 = arith.addf %14, %257 : vector<1x512xf32>
    %259 = vector.extract_strided_slice %258 {offsets = [0, 0], sizes = [1, 128], strides = [1, 1]} : vector<1x512xf32> to vector<1x128xf32>
    %cst_80 = arith.constant 5.000000e-01 : f32
    %260 = vector.broadcast %cst_80 : f32 to vector<1x128xf32>
    %261 = arith.mulf %260, %259 : vector<1x128xf32>
    %262 = math.tanh %261 : vector<1x128xf32>
    %cst_81 = arith.constant 5.000000e-01 : f32
    %263 = vector.broadcast %cst_81 : f32 to vector<1x128xf32>
    %264 = arith.mulf %263, %262 : vector<1x128xf32>
    %cst_82 = arith.constant 5.000000e-01 : f32
    %265 = vector.broadcast %cst_82 : f32 to vector<1x128xf32>
    %266 = arith.addf %264, %265 : vector<1x128xf32>
    %267 = vector.extract_strided_slice %258 {offsets = [0, 128], sizes = [1, 128], strides = [1, 1]} : vector<1x512xf32> to vector<1x128xf32>
    %cst_83 = arith.constant 5.000000e-01 : f32
    %268 = vector.broadcast %cst_83 : f32 to vector<1x128xf32>
    %269 = arith.mulf %268, %267 : vector<1x128xf32>
    %270 = math.tanh %269 : vector<1x128xf32>
    %cst_84 = arith.constant 5.000000e-01 : f32
    %271 = vector.broadcast %cst_84 : f32 to vector<1x128xf32>
    %272 = arith.mulf %271, %270 : vector<1x128xf32>
    %cst_85 = arith.constant 5.000000e-01 : f32
    %273 = vector.broadcast %cst_85 : f32 to vector<1x128xf32>
    %274 = arith.addf %272, %273 : vector<1x128xf32>
    %275 = vector.extract_strided_slice %258 {offsets = [0, 256], sizes = [1, 128], strides = [1, 1]} : vector<1x512xf32> to vector<1x128xf32>
    %276 = math.tanh %275 : vector<1x128xf32>
    %277 = vector.extract_strided_slice %258 {offsets = [0, 384], sizes = [1, 128], strides = [1, 1]} : vector<1x512xf32> to vector<1x128xf32>
    %cst_86 = arith.constant 5.000000e-01 : f32
    %278 = vector.broadcast %cst_86 : f32 to vector<1x128xf32>
    %279 = arith.mulf %278, %277 : vector<1x128xf32>
    %280 = math.tanh %279 : vector<1x128xf32>
    %cst_87 = arith.constant 5.000000e-01 : f32
    %281 = vector.broadcast %cst_87 : f32 to vector<1x128xf32>
    %282 = arith.mulf %281, %280 : vector<1x128xf32>
    %cst_88 = arith.constant 5.000000e-01 : f32
    %283 = vector.broadcast %cst_88 : f32 to vector<1x128xf32>
    %284 = arith.addf %282, %283 : vector<1x128xf32>
    %285 = arith.mulf %274, %253 : vector<1x128xf32>
    %286 = arith.mulf %266, %276 : vector<1x128xf32>
    %287 = arith.addf %285, %286 : vector<1x128xf32>
    %288 = math.tanh %287 : vector<1x128xf32>
    %289 = arith.mulf %284, %288 : vector<1x128xf32>
    %290 = tpu.concatenate %51, %85, %119, %153, %187, %221, %255, %289 in 0 : vector<1x128xf32>, vector<1x128xf32>, vector<1x128xf32>, vector<1x128xf32>, vector<1x128xf32>, vector<1x128xf32>, vector<1x128xf32>, vector<1x128xf32> -> vector<8x128xf32>
    %291 = arith.truncf %290 : vector<8x128xf32> to vector<8x128xbf16>
    %c0_89 = arith.constant 0 : index
    %c0_90 = arith.constant 0 : index
    %292 = vector.load %arg4[%c0_89, %c0_90] : memref<128x128xbf16, #tpu.memory_space<vmem>>, vector<128x128xbf16>
    %cst_91 = arith.constant dense<0.000000e+00> : vector<8x128xf32>
    %293 = tpu.matmul %291, %292, %cst_91 {dimension_numbers = #tpu.dot_dimension_numbers<[1], [0], [0], [1], [0, 0, 1, 1], [], []>} : vector<8x128xbf16>, vector<128x128xbf16>, vector<8x128xf32> -> vector<8x128xf32>
    %c0_92 = arith.constant 0 : index
    %c0_93 = arith.constant 0 : index
    %294 = vector.load %arg5[%c0_92, %c0_93] : memref<1x128xf32, #tpu.memory_space<vmem>>, vector<1x128xf32>
    %295 = vector.broadcast %294 : vector<1x128xf32> to vector<8x128xf32>
    %296 = arith.addf %293, %295 : vector<8x128xf32>
    %cst_94 = arith.constant dense<0xFF800000> : vector<8xf32>
    %297 = vector.multi_reduction <maximumf>, %296, %cst_94 [1] : vector<8x128xf32> to vector<8xf32>
    %298 = vector.shape_cast %297 : vector<8xf32> to vector<8x1xf32>
    %299 = vector.broadcast %298 : vector<8x1xf32> to vector<8x128xf32>
    %300 = arith.subf %296, %299 : vector<8x128xf32>
    %301 = math.exp %300 : vector<8x128xf32>
    %cst_95 = arith.constant dense<0.000000e+00> : vector<8xf32>
    %302 = vector.multi_reduction <add>, %301, %cst_95 [1] : vector<8x128xf32> to vector<8xf32>
    %303 = vector.shape_cast %302 : vector<8xf32> to vector<8x1xf32>
    %304 = math.log %303 : vector<8x1xf32>
    %305 = vector.broadcast %304 : vector<8x1xf32> to vector<8x128xf32>
    %306 = arith.subf %300, %305 : vector<8x128xf32>
    %c0_96 = arith.constant 0 : index
    %c0_97 = arith.constant 0 : index
    %307 = vector.load %arg6[%c0_96, %c0_97] : memref<8x128xf32, #tpu.memory_space<vmem>>, vector<8x128xf32>
    tpu.vector_store %arg6[%c0_96, %c0_97], %306 {strides = array<i32>} : memref<8x128xf32, #tpu.memory_space<vmem>>, vector<8x128xf32>,
    return
  }
}

</mosaic_0001>

<bundles_post_ra>
// kernel: lstm_tagger_forward.1
= control target key start
LH: loop header
LB: loop body
LE: loop exit
PB: predicated region body
PF: predicated region fallthrough
CT: control target
= control target key end

     0   :  { %11 = vsyncpa [#allocation3], 0  ;;  %s2499_s0 = inlined_call_operand.hbm [shape: f32[8,16], index: 0, kind: input, shape index: {}]   ;;  %s2500_s1 = inlined_call_operand.hbm [shape: bf16[16,512], index: 1, kind: input, shape index: {}]   ;;  %s2501_s2 = inlined_call_operand.hbm [shape: bf16[128,512], index: 2, kind: input, shape index: {}]   ;;  %s2502_s3 = inlined_call_operand.hbm [shape: f32[1,512], index: 3, kind: input, shape index: {}]   ;;  %s2503_s4 = inlined_call_operand.hbm [shape: bf16[128,128], index: 4, kind: input, shape index: {}]   ;;  %s2504_s5 = inlined_call_operand.vmem [shape: f32[1,128], index: 5, kind: input, shape index: {}]   ;;  %s2505_s6 = inlined_call_operand.hbm [shape: f32[8,128], index: 6, kind: output, shape index: {}]  }
   0x1   :  { %12 = vsyncpa [#allocation6], 0 }
   0x2   :  { %13 = vsyncpa [#allocation9], 0 }
   0x3   :  { %14 = vsyncpa [#allocation4], 0  ;;  %s1943_s21 = smov [#allocation5]   ;;  %s1803_s25 = scalar_lea.hbm %s2500_s1, 512 }
   0x4   :  { %s30_s22 = sshll.u32 %s1943_s21, 4  ;;  %p1804_p0 = scmp.ne.s32.totalorder %s2500_s1, %s1803_s25  ;;  %s31_s22 = int_to_ptr.vmem [resolvable:$true] %s30_s22 }
   0x5   :  { %p1807_p1 = scmp.lt.u32.totalorder %s1803_s25, %s2500_s1 }
   0x7   :  { %p1809_p2 = pnand %p1807_p1, %p1804_p0 }
   0x9   :  { %1812 = shalt.err (!%p1809_p2)
}
   0xa   :  { %s1813_s30 = scalar_lea.vmem %s31_s22, 512  ;;  %p1818_p4 = scmp.lt.s32.totalorder %s31_s22, %s31_s22 }
   0xb   :  { %p1814_p3 = scmp.ne.s32.totalorder %s31_s22, %s1813_s30  ;;  %p1819_p5 = scmp.lt.s32.totalorder %s1813_s30, %s1813_s30 }
   0xd   :  { %p1820_p6 = por %p1819_p5, %p1818_p4 }
   0xf   :  { %p1821_p7 = pnand %p1820_p6, %p1814_p3 }
  0x11   :  { %1824 = shalt.err (!%p1821_p7)
}
  0x12   :  { %s1944_s7 = smov 256   ;;  %s1945_s8 = smov 16  }
  0x13   :  { %36 = dma.hbm_to_vmem [thread:$0]  %s2500_s1, 512, %s31_s22, [#allocation6], %s1944_s7, %s1944_s7, %s1945_s8  }
  0x14   :  { %s1946_s11 = smov [#allocation8]   ;;  %s1947_s13 = smov [#allocation2]  }
  0x15   :  { %s55_s12 = sshll.u32 %s1946_s11, 4  ;;  %s21_s14 = sshll.u32 %s1947_s13, 4  ;;  %s56_s12 = int_to_ptr.vmem [resolvable:$true] %s55_s12  ;;  %s22_s14 = int_to_ptr.vmem [resolvable:$true] %s21_s14 }
  0x16   :  { %s1825_s17 = scalar_lea.hbm %s2502_s3, 64 }
  0x17   :  { %p1826_p8 = scmp.ne.s32.totalorder %s2502_s3, %s1825_s17  ;;  %p1829_p9 = scmp.lt.u32.totalorder %s1825_s17, %s2502_s3 }
  0x19   :  { %p1831_p10 = pnand %p1829_p9, %p1826_p8 }
  0x1b   :  { %1834 = shalt.err (!%p1831_p10)
}
  0x1c   :  { %s1835_s1 = scalar_lea.vmem %s56_s12, 64  ;;  %p1840_p12 = scmp.lt.s32.totalorder %s56_s12, %s56_s12 }
  0x1d   :  { %p1836_p11 = scmp.ne.s32.totalorder %s56_s12, %s1835_s1  ;;  %p1841_p13 = scmp.lt.s32.totalorder %s1835_s1, %s1835_s1 }
  0x1f   :  { %p1842_p0 = por %p1841_p13, %p1840_p12 }
  0x21   :  { %p1843_p1 = pnand %p1842_p0, %p1836_p11 }
  0x23   :  { %1846 = shalt.err (!%p1843_p1)
}
  0x24   :  { %58 = dma.hbm_to_vmem [thread:$0]  %s2502_s3, 64, %s56_s12, [#allocation9]  }
  0x25   :  { %s1847_s26 = scalar_lea.hbm %s2499_s0, 128 }
  0x26   :  { %p1848_p2 = scmp.ne.s32.totalorder %s2499_s0, %s1847_s26  ;;  %p1851_p3 = scmp.lt.u32.totalorder %s1847_s26, %s2499_s0 }
  0x28   :  { %p1853_p4 = pnand %p1851_p3, %p1848_p2 }
  0x2a   :  { %1856 = shalt.err (!%p1853_p4)
}
  0x2b   :  { %s1857_s9 = scalar_lea.vmem %s22_s14, 128  ;;  %p1862_p6 = scmp.lt.s32.totalorder %s22_s14, %s22_s14 }
  0x2c   :  { %p1858_p5 = scmp.ne.s32.totalorder %s22_s14, %s1857_s9  ;;  %p1863_p7 = scmp.lt.s32.totalorder %s1857_s9, %s1857_s9 }
  0x2e   :  { %p1864_p8 = por %p1863_p7, %p1862_p6 }
  0x30   :  { %p1865_p9 = pnand %p1864_p8, %p1858_p5 }
  0x32   :  { %1868 = shalt.err (!%p1865_p9)
}
  0x33   :  { %24 = dma.hbm_to_vmem [thread:$0]  %s2499_s0, 128, %s22_s14, [#allocation3]  }
  0x34   :  { %s1948_s11 = smov [#allocation7]   ;;  %s1949_s13 = smov [#allocation10]  }
  0x35   :  { %s42_s12 = sshll.u32 %s1948_s11, 4  ;;  %s64_s15 = sshll.u32 %s1949_s13, 4  ;;  %s43_s12 = int_to_ptr.vmem [resolvable:$true] %s42_s12  ;;  %s65_s15 = int_to_ptr.vmem [resolvable:$true] %s64_s15 }
  0x36   :  { %s1869_s18 = scalar_lea.hbm %s2501_s2, 4096 }
  0x37   :  { %p1870_p10 = scmp.ne.s32.totalorder %s2501_s2, %s1869_s18  ;;  %p1873_p11 = scmp.lt.u32.totalorder %s1869_s18, %s2501_s2 }
  0x39   :  { %p1875_p12 = pnand %p1873_p11, %p1870_p10 }
  0x3b   :  { %1878 = shalt.err (!%p1875_p12)
}
  0x3c   :  { %s1879_s0 = scalar_lea.vmem %s43_s12, 4096  ;;  %p1884_p0 = scmp.lt.s32.totalorder %s43_s12, %s43_s12 }
  0x3d   :  { %p1880_p13 = scmp.ne.s32.totalorder %s43_s12, %s1879_s0  ;;  %p1885_p1 = scmp.lt.s32.totalorder %s1879_s0, %s1879_s0 }
  0x3f   :  { %p1886_p2 = por %p1885_p1, %p1884_p0 }
  0x41   :  { %p1887_p3 = pnand %p1886_p2, %p1880_p13 }
  0x43   :  { %1890 = shalt.err (!%p1887_p3)
}
  0x44   :  { %48 = dma.hbm_to_vmem [thread:$0]  %s2501_s2, 4096, %s43_s12, [#allocation6], %s1944_s7, %s1944_s7, %s1945_s8  }
  0x45   :  { %s1891_s25 = scalar_lea.hbm %s2503_s4, 1024 }
  0x46   :  { %p1892_p4 = scmp.ne.s32.totalorder %s2503_s4, %s1891_s25  ;;  %p1895_p5 = scmp.lt.u32.totalorder %s1891_s25, %s2503_s4 }
  0x48   :  { %p1897_p6 = pnand %p1895_p5, %p1892_p4 }
  0x4a   :  { %1900 = shalt.err (!%p1897_p6)
}
  0x4b   :  { %s1901_s30 = scalar_lea.vmem %s65_s15, 1024  ;;  %p1906_p8 = scmp.lt.s32.totalorder %s65_s15, %s65_s15 }
  0x4c   :  { %p1902_p7 = scmp.ne.s32.totalorder %s65_s15, %s1901_s30  ;;  %p1907_p9 = scmp.lt.s32.totalorder %s1901_s30, %s1901_s30 }
  0x4e   :  { %p1908_p10 = por %p1907_p9, %p1906_p8 }
  0x50   :  { %p1909_p11 = pnand %p1908_p10, %p1902_p7 }
  0x52   :  { %1912 = shalt.err (!%p1909_p11)
}
  0x53   :  { %s1950_s2 = smov 64   ;;  %s1951_s7 = smov 4  }
  0x54   :  { %70 = dma.hbm_to_vmem [thread:$0]  %s2503_s4, 1024, %s65_s15, [#allocation9], %s1950_s2, %s1950_s2, %s1951_s7  }
  0x55   :  { %1935 = dma.done.wait [#allocation3], 128  }
  0x56   :  { %1936 = vsyncadd [#allocation3], 4294967168 }
  0x57   :  { %1937 = dma.done.wait [#allocation6], 4608  }
  0x58   :  { %1938 = vsyncadd [#allocation6], 4294962688 }
  0x59   :  { %1939 = dma.done.wait [#allocation9], 1088  }
  0x5a   :  { %1940 = vsyncadd [#allocation9], 4294966208  ;;  %v1952_v0 = vmov 0   ;;  %v1625_v1 = vld [vmem:[#allocation5 + $0x4] ss:$16 sps:$4 sm:$0xff]   ;;  %v89_v5 = vld [vmem:[#allocation2] sm:$0xff]  ;;  %v97_v46 = vlaneseq }
  0x5b   :  { %173 = vmatprep.mubr.bf16.mxu1 %v1952_v0  ;;  %447 = vmatprep.mubr.bf16.mxu0 %v1952_v0  ;;  %v2059_v2 = vld [vmem:[#allocation7 + $0x4] ss:$16 sps:$4 sm:$0xff]   ;;  %v1629_v3 = vld [vmem:[#allocation5] ss:$16 sps:$4 sm:$0xff]   ;;  %v90_v6 = vpack.c.bf16 %v89_v5, %v89_v5  ;;  %v1631_v7 = vld [vmem:[#allocation5 + $0x8] ss:$16 sps:$4 sm:$0xff]  }
  0x5c   :  { %141 = vmatprep.subr.bf16.mxu1 %v1625_v1  ;;  %v2061_v4 = vld [vmem:[#allocation7] ss:$16 sps:$4 sm:$0xff]   ;;  %415 = vmatprep.subr.bf16.mxu0 %v2059_v2  ;;  %vm137_vm0 = vcmask 130048   ;;  %v1633_v8 = vld [vmem:[#allocation5 + $0xc] ss:$16 sps:$4 sm:$0xff]   ;;  %v98_v48 = vshrl.u32 %v97_v46, 7 }
  0x5d   :  { %142 = vmatpush1.bf16.msra.mxu1 %v1629_v3  ;;  %416 = vmatpush1.bf16.msra.mxu0 %v2061_v4  ;;  %v2065_v9 = vld [vmem:[#allocation7 + $0x24] ss:$16 sps:$4 sm:$0xff]   ;;  %v2067_v10 = vld [vmem:[#allocation7 + $0x20] ss:$16 sps:$4 sm:$0xff]   ;;  %v2073_v12 = vld [vmem:[#allocation7 + $0xc] ss:$16 sps:$4 sm:$0xff]  }
  0x5e   :  { %182 = vmatprep.subr.bf16.mxu1 %v1633_v8  ;;  %v2069_v11 = vld [vmem:[#allocation7 + $0x44] ss:$16 sps:$4 sm:$0xff]   ;;  %417 = vmatprep.subr.bf16.mxu0 %v2065_v9  ;;  %v2076_v13 = vld [vmem:[#allocation7 + $0x40] ss:$16 sps:$4 sm:$0xff]   ;;  %v2083_v15 = vld [vmem:[#allocation7 + $0x8] ss:$16 sps:$4 sm:$0xff]  }
  0x5f   :  { %v2080_v14 = vld [vmem:[#allocation7 + $0x64] ss:$16 sps:$4 sm:$0xff]   ;;  %v2085_v16 = vld [vmem:[#allocation7 + $0x60] ss:$16 sps:$4 sm:$0xff]   ;;  %v2088_v17 = vld [vmem:[#allocation7 + $0x2c] ss:$16 sps:$4 sm:$0xff]  }
  0x60   :  { %1540 = vmatmul.mubr.msk.bf16.vlgmr.msra.gmra.mrb[0].mxu1 %vm137_vm0, %v90_v6  ;;  %v2091_v18 = vld [vmem:[#allocation7 + $0x84] ss:$16 sps:$4 sm:$0xff]   ;;  %v2094_v19 = vld [vmem:[#allocation7 + $0x28] ss:$16 sps:$4 sm:$0xff]   ;;  %v2098_v20 = vld [vmem:[#allocation7 + $0x80] ss:$16 sps:$4 sm:$0xff]  }
  0x61   :  { %183 = vmatpush1.bf16.msra.mxu1 %v1631_v7  ;;  %418 = vmatpush1.bf16.msra.mxu0 %v2067_v10  ;;  %v2102_v21 = vld [vmem:[#allocation7 + $0x4c] ss:$16 sps:$4 sm:$0xff]   ;;  %v2104_v22 = vld [vmem:[#allocation7 + $0xa4] ss:$16 sps:$4 sm:$0xff]   ;;  %v2107_v23 = vld [vmem:[#allocation7 + $0x48] ss:$16 sps:$4 sm:$0xff]  }
  0x62   :  { %419 = vmatprep.subr.bf16.mxu0 %v2069_v11  ;;  %214 = vmatprep.mubr.bf16.mxu1 %v1952_v0  ;;  %v2111_v24 = vld [vmem:[#allocation7 + $0xa0] ss:$16 sps:$4 sm:$0xff]   ;;  %v2115_v25 = vld [vmem:[#allocation7 + $0x6c] ss:$16 sps:$4 sm:$0xff]   ;;  %v2117_v26 = vld [vmem:[#allocation7 + $0xc4] ss:$16 sps:$4 sm:$0xff]  }
  0x63   :  { %456 = vmatprep.subr.bf16.mxu1 %v2073_v12  ;;  %v2119_v27 = vld [vmem:[#allocation7 + $0x68] ss:$16 sps:$4 sm:$0xff]   ;;  %v2121_v28 = vld [vmem:[#allocation7 + $0xc0] ss:$16 sps:$4 sm:$0xff]   ;;  %v2125_v29 = vld [vmem:[#allocation7 + $0x8c] ss:$16 sps:$4 sm:$0xff]  }
  0x64   :  { %v2127_v30 = vld [vmem:[#allocation7 + $0xe4] ss:$16 sps:$4 sm:$0xff]   ;;  %v2131_v31 = vld [vmem:[#allocation7 + $0x88] ss:$16 sps:$4 sm:$0xff]   ;;  %v2133_v32 = vld [vmem:[#allocation7 + $0xe0] ss:$16 sps:$4 sm:$0xff]  }
  0x65   :  { %420 = vmatpush1.bf16.msra.mxu0 %v2076_v13  ;;  %v2135_v33 = vld [vmem:[#allocation7 + $0xac] ss:$16 sps:$4 sm:$0xff]   ;;  %v2143_v34 = vld [vmem:[#allocation7 + $0xa8] ss:$16 sps:$4 sm:$0xff]   ;;  %v99_v49 = vsub.s32 0, %v98_v48  ;;  %v103_v51 = vsub.s32 1, %v98_v48 }
  0x66   :  { %421 = vmatprep.subr.bf16.mxu0 %v2080_v14  ;;  %v2146_v35 = vld [vmem:[#allocation7 + $0xcc] ss:$16 sps:$4 sm:$0xff]   ;;  %v2151_v36 = vld [vmem:[#allocation7 + $0xc8] ss:$16 sps:$4 sm:$0xff]   ;;  %v95_v50 = vld [vmem:[#allocation8] sm:$0xf] }
  0x67   :  { %v2155_v37 = vld [vmem:[#allocation7 + $0xec] ss:$16 sps:$4 sm:$0xff]   ;;  %v2160_v38 = vld [vmem:[#allocation7 + $0xe8] ss:$16 sps:$4 sm:$0xff]   ;;  %v100_v52 = vrot.slane %v95_v50, %v99_v49  ;;  %v104_v53 = vrot.slane %v95_v50, %v103_v51  ;;  %v107_v61 = vsub.s32 2, %v98_v48  ;;  %v111_v1 = vsub.s32 3, %v98_v48 }
  0x68   :  { %1541 = vmatmul.mubr.msk.bf16.vlgmr.msra.gmra.mrb[4].mxu1 %vm137_vm0, %v90_v6  ;;  %vm1382_vm1 = vcmask 1040384   ;;  %vm1384_vm2 = vcmask 1041408   ;;  %vm1386_vm3 = vcmask 1042432   ;;  %vm1388_vm4 = vcmask 1043456   ;;  %s1955_s10 = smov [#allocation11]  }
  0x69   :  { %457 = vmatpush1.bf16.msra.mxu1 %v2083_v15  ;;  %422 = vmatpush1.bf16.msra.mxu0 %v2085_v16  ;;  %v108_v5 = vrot.slane %v95_v50, %v107_v61  ;;  %v112_v6 = vrot.slane %v95_v50, %v111_v1  ;;  %vm1390_vm5 = vcmask 1044480   ;;  %vm1392_vm6 = vcmask 1045504   ;;  %s1525_s11 = sshll.u32 %s1955_s10, 4  ;;  %s1526_s11 = int_to_ptr.vmem [resolvable:$true] %s1525_s11 }
  0x6a   :  { %458 = vmatprep.subr.bf16.mxu1 %v2088_v17  ;;  %423 = vmatprep.subr.bf16.mxu0 %v2091_v18  ;;  %vm1954_vm7 = vmmov 0   ;;  %vm1394_vm8 = vcmask 1046528   ;;  %p1918_p13 = scmp.lt.s32.totalorder %s1526_s11, %s1526_s11 }
  0x6b   :  { %488 = vmatprep.mubr.bf16.mxu1 %v1952_v0 }
  0x6d   :  { %459 = vmatpush1.bf16.msra.mxu1 %v2094_v19  ;;  %424 = vmatpush1.bf16.msra.mxu0 %v2098_v20 }
  0x6e   :  { %460 = vmatprep.subr.bf16.mxu1 %v2102_v21  ;;  %425 = vmatprep.subr.bf16.mxu0 %v2104_v22 }
  0x71   :  { %461 = vmatpush1.bf16.msra.mxu1 %v2107_v23  ;;  %426 = vmatpush1.bf16.msra.mxu0 %v2111_v24 }
  0x72   :  { %462 = vmatprep.subr.bf16.mxu1 %v2115_v25  ;;  %427 = vmatprep.subr.bf16.mxu0 %v2117_v26 }
  0x75   :  { %463 = vmatpush1.bf16.msra.mxu1 %v2119_v27  ;;  %428 = vmatpush1.bf16.msra.mxu0 %v2121_v28 }
  0x76   :  { %464 = vmatprep.subr.bf16.mxu1 %v2125_v29  ;;  %429 = vmatprep.subr.bf16.mxu0 %v2127_v30 }
  0x79   :  { %465 = vmatpush1.bf16.msra.mxu1 %v2131_v31  ;;  %430 = vmatpush1.bf16.msra.mxu0 %v2133_v32 }
  0x7a   :  { %466 = vmatprep.subr.bf16.mxu1 %v2135_v33  ;;  %520 = vmatprep.subr.bf16.mxu0 %v2059_v2 }
  0x7c   :  { %448 = vmatmul.mubr.bf16.vlgmr.msra.gmra.mrb[0].mxu0 %v1952_v0 }
  0x7d   :  { %467 = vmatpush1.bf16.msra.mxu1 %v2143_v34  ;;  %521 = vmatpush1.bf16.msra.mxu0 %v2061_v4 }
  0x7e   :  { %468 = vmatprep.subr.bf16.mxu1 %v2146_v35  ;;  %522 = vmatprep.subr.bf16.mxu0 %v2065_v9 }
  0x7f   :  { %552 = vmatprep.mubr.bf16.mxu0 %v1952_v0 }
  0x81   :  { %469 = vmatpush1.bf16.msra.mxu1 %v2151_v36  ;;  %523 = vmatpush1.bf16.msra.mxu0 %v2067_v10 }
  0x82   :  { %470 = vmatprep.subr.bf16.mxu1 %v2155_v37  ;;  %524 = vmatprep.subr.bf16.mxu0 %v2069_v11 }
  0x85   :  { %471 = vmatpush1.bf16.msra.mxu1 %v2160_v38  ;;  %525 = vmatpush1.bf16.msra.mxu0 %v2076_v13 }
  0x86   :  { %561 = vmatprep.subr.bf16.mxu1 %v2073_v12  ;;  %526 = vmatprep.subr.bf16.mxu0 %v2080_v14 }
  0x88   :  { %489 = vmatmul.mubr.bf16.vlgmr.msra.gmra.mrb[8].mxu1 %v1952_v0 }
  0x89   :  { %562 = vmatpush1.bf16.msra.mxu1 %v2083_v15  ;;  %527 = vmatpush1.bf16.msra.mxu0 %v2085_v16 }
  0x8a   :  { %563 = vmatprep.subr.bf16.mxu1 %v2088_v17  ;;  %528 = vmatprep.subr.bf16.mxu0 %v2091_v18 }
  0x8b   :  { %593 = vmatprep.mubr.bf16.mxu1 %v1952_v0 }
  0x8d   :  { %564 = vmatpush1.bf16.msra.mxu1 %v2094_v19  ;;  %529 = vmatpush1.bf16.msra.mxu0 %v2098_v20 }
  0x8e   :  { %565 = vmatprep.subr.bf16.mxu1 %v2102_v21  ;;  %530 = vmatprep.subr.bf16.mxu0 %v2104_v22 }
  0x91   :  { %566 = vmatpush1.bf16.msra.mxu1 %v2107_v23  ;;  %531 = vmatpush1.bf16.msra.mxu0 %v2111_v24 }
  0x92   :  { %567 = vmatprep.subr.bf16.mxu1 %v2115_v25  ;;  %532 = vmatprep.subr.bf16.mxu0 %v2117_v26 }
  0x95   :  { %568 = vmatpush1.bf16.msra.mxu1 %v2119_v27  ;;  %533 = vmatpush1.bf16.msra.mxu0 %v2121_v28 }
  0x96   :  { %569 = vmatprep.subr.bf16.mxu1 %v2125_v29  ;;  %534 = vmatprep.subr.bf16.mxu0 %v2127_v30 }
  0x99   :  { %570 = vmatpush1.bf16.msra.mxu1 %v2131_v31  ;;  %535 = vmatpush1.bf16.msra.mxu0 %v2133_v32 }
  0x9a   :  { %571 = vmatprep.subr.bf16.mxu1 %v2135_v33  ;;  %644 = vmatprep.subr.bf16.mxu0 %v2059_v2 }
  0x9d   :  { %572 = vmatpush1.bf16.msra.mxu1 %v2143_v34 }
  0x9e   :  { %573 = vmatprep.subr.bf16.mxu1 %v2146_v35 }
  0xa1   :  { %574 = vmatpush1.bf16.msra.mxu1 %v2151_v36 }
  0xa2   :  { %575 = vmatprep.subr.bf16.mxu1 %v2155_v37 }
  0xa5   :  { %576 = vmatpush1.bf16.msra.mxu1 %v2160_v38 }
  0xa6   :  { %685 = vmatprep.subr.bf16.mxu1 %v2073_v12 }
 0x133   :  { %v175_v39 = vpop.f32.mrb[0].mxu1 }
 0x134   :  { %v177_v40 = vpop.f32.mrb[1].mxu1  ;;  %v2197_v54 = vadd.f32 %v175_v39, %v100_v52 }
 0x135   :  { %v179_v41 = vpop.f32.mrb[2].mxu1  ;;  %v2199_v55 = vadd.f32 %v177_v40, %v104_v53 }
 0x136   :  { %v180_v42 = vpop.f32.mrb[3].mxu1 }
 0x13b   :  { %v216_v43 = vpop.f32.mrb[4].mxu1 }
 0x13c   :  { %v218_v44 = vpop.f32.mrb[5].mxu1  ;;  %v2203_v7 = vadd.f32 %v216_v43, %v108_v5 }
 0x13d   :  { %v220_v45 = vpop.f32.mrb[6].mxu1  ;;  %v2205_v8 = vadd.f32 %v218_v44, %v112_v6 }
 0x13e   :  { %v221_v47 = vpop.f32.mrb[7].mxu1 }
 0x14f   :  { %v449_v56 = vpop.f32.mrb[0].mxu0 }
 0x150   :  { %v497_v57 = vadd.f32 %v449_v56, %v2197_v54  ;;  %v451_v58 = vpop.f32.mrb[1].mxu0 }
 0x151   :  { %v498_v59 = vadd.f32 %v451_v58, %v2199_v55  ;;  %v453_v60 = vpop.f32.mrb[2].mxu0 }
 0x152   :  { %v501_v62 = vmul.f32 0.5, %v497_v57  ;;  %v454_v63 = vpop.f32.mrb[3].mxu0 }
 0x153   :  { %v505_v3 = vmul.f32 0.5, %v498_v59 }
 0x155   :  { %1687 = vtanh.f32 %v505_v3 }
 0x156   :  { %1689 = vtanh.f32 %v501_v62 }
 0x15b   :  { %v490_v39 = vpop.f32.mrb[8].mxu1 }
 0x15c   :  { %v499_v40 = vadd.f32 %v490_v39, %v2203_v7  ;;  %v492_v41 = vpop.f32.mrb[9].mxu1 }
 0x15d   :  { %v500_v42 = vadd.f32 %v492_v41, %v2205_v8  ;;  %v494_v45 = vpop.f32.mrb[10].mxu1 }
 0x15e   :  { %1691 = vtanh.f32 %v499_v40  ;;  %v495_v46 = vpop.f32.mrb[11].mxu1 }
 0x15f   :  { %v1688_v47 = vpop.eup %1687  ;;  %v510_v51 = vmul.f32 0.5, %v500_v42 }
 0x160   :  { %v1690_v48 = vpop.eup %1689  ;;  %v507_v49 = vmul.f32 0.5, %v1688_v47 }
 0x161   :  { %v503_v52 = vmul.f32 0.5, %v1690_v48  ;;  %1693 = vtanh.f32 %v510_v51 }
 0x162   :  { %v508_v53 = vadd.f32 0.5, %v507_v49 }
 0x163   :  { %v504_v43 = vadd.f32 0.5, %v503_v52 }
 0x164   :  { %v514_v44 = vmul.f32 0.0, %v508_v53 }
 0x168   :  { %v1692_v50 = vpop.eup %1691 }
 0x169   :  { %v515_v56 = vmul.f32 %v1692_v50, %v504_v43 }
 0x16b   :  { %v2209_v57 = vadd.f32 %v515_v56, %v514_v44  ;;  %v1694_v58 = vpop.eup %1693 }
 0x16c   :  { %v512_v59 = vmul.f32 0.5, %v1694_v58 }
 0x16d   :  { %1695 = vtanh.f32 %v2209_v57 }
 0x16e   :  { %v513_v60 = vadd.f32 0.5, %v512_v59 }
 0x177   :  { %v1696_v61 = vpop.eup %1695 }
 0x178   :  { %v2212_v62 = vmul.f32 %v1696_v61, %v513_v60 }
 0x17a   :  { %v519_v63 = vpack.c.bf16 %v2212_v62, %v2212_v62 }
 0x17c   :  { %553 = vmatmul.mubr.bf16.vlgmr.msra.gmra.mrb[4].mxu0 %v519_v63  ;;  %594 = vmatmul.mubr.bf16.vlgmr.msra.gmra.mrb[12].mxu1 %v519_v63 }
 0x17d   :  { %645 = vmatpush1.bf16.msra.mxu0 %v2061_v4  ;;  %686 = vmatpush1.bf16.msra.mxu1 %v2083_v15 }
 0x17e   :  { %646 = vmatprep.subr.bf16.mxu0 %v2065_v9  ;;  %687 = vmatprep.subr.bf16.mxu1 %v2088_v17 }
 0x17f   :  { %676 = vmatprep.mubr.bf16.mxu0 %v1952_v0  ;;  %717 = vmatprep.mubr.bf16.mxu1 %v1952_v0 }
 0x181   :  { %647 = vmatpush1.bf16.msra.mxu0 %v2067_v10  ;;  %688 = vmatpush1.bf16.msra.mxu1 %v2094_v19 }
 0x182   :  { %648 = vmatprep.subr.bf16.mxu0 %v2069_v11  ;;  %689 = vmatprep.subr.bf16.mxu1 %v2102_v21 }
 0x185   :  { %649 = vmatpush1.bf16.msra.mxu0 %v2076_v13  ;;  %690 = vmatpush1.bf16.msra.mxu1 %v2107_v23 }
 0x186   :  { %650 = vmatprep.subr.bf16.mxu0 %v2080_v14  ;;  %691 = vmatprep.subr.bf16.mxu1 %v2115_v25 }
 0x189   :  { %651 = vmatpush1.bf16.msra.mxu0 %v2085_v16  ;;  %692 = vmatpush1.bf16.msra.mxu1 %v2119_v27 }
 0x18a   :  { %652 = vmatprep.subr.bf16.mxu0 %v2091_v18  ;;  %693 = vmatprep.subr.bf16.mxu1 %v2125_v29 }
 0x18d   :  { %653 = vmatpush1.bf16.msra.mxu0 %v2098_v20  ;;  %694 = vmatpush1.bf16.msra.mxu1 %v2131_v31 }
 0x18e   :  { %654 = vmatprep.subr.bf16.mxu0 %v2104_v22  ;;  %695 = vmatprep.subr.bf16.mxu1 %v2135_v33 }
 0x191   :  { %655 = vmatpush1.bf16.msra.mxu0 %v2111_v24  ;;  %696 = vmatpush1.bf16.msra.mxu1 %v2143_v34 }
 0x192   :  { %656 = vmatprep.subr.bf16.mxu0 %v2117_v26  ;;  %697 = vmatprep.subr.bf16.mxu1 %v2146_v35 }
 0x195   :  { %657 = vmatpush1.bf16.msra.mxu0 %v2121_v28  ;;  %698 = vmatpush1.bf16.msra.mxu1 %v2151_v36 }
 0x196   :  { %658 = vmatprep.subr.bf16.mxu0 %v2127_v30  ;;  %699 = vmatprep.subr.bf16.mxu1 %v2155_v37 }
 0x199   :  { %659 = vmatpush1.bf16.msra.mxu0 %v2133_v32  ;;  %700 = vmatpush1.bf16.msra.mxu1 %v2160_v38 }
 0x19a   :  { %767 = vmatprep.subr.bf16.mxu0 %v2059_v2  ;;  %808 = vmatprep.subr.bf16.mxu1 %v2073_v12 }
 0x24f   :  { %v554_v1 = vpop.f32.mrb[4].mxu0  ;;  %v595_v3 = vpop.f32.mrb[12].mxu1 }
 0x250   :  { %v606_v5 = vrot.slane %v554_v1, 7  ;;  %v556_v6 = vpop.f32.mrb[5].mxu0  ;;  %v597_v39 = vpop.f32.mrb[13].mxu1  ;;  %v608_v46 = vrot.slane %v595_v3, 7  ;;  %v632_v3 = vrot.slane %v2209_v57, 7 }
 0x251   :  { %v607_v40 = vrot.slane %v556_v6, 7  ;;  %v558_v41 = vpop.f32.mrb[6].mxu0  ;;  %v599_v42 = vpop.f32.mrb[14].mxu1  ;;  %v609_v43 = vrot.slane %v597_v39, 7 }
 0x252   :  { %v614_v45 = vadd.f32 %v606_v5, %v2197_v54  ;;  %v559_v47 = vpop.f32.mrb[7].mxu0  ;;  %v600_v48 = vpop.f32.mrb[15].mxu1  ;;  %v616_v53 = vadd.f32 %v608_v46, %v2203_v7 }
 0x253   :  { %v615_v49 = vadd.f32 %v607_v40, %v2199_v55  ;;  %v617_v50 = vadd.f32 %v609_v43, %v2205_v8 }
 0x254   :  { %v618_v51 = vmul.f32 0.5, %v614_v45 }
 0x255   :  { %v622_v52 = vmul.f32 0.5, %v615_v49  ;;  %v627_v44 = vmul.f32 0.5, %v617_v50 }
 0x256   :  { %1697 = vtanh.f32 %v618_v51 }
 0x257   :  { %1699 = vtanh.f32 %v622_v52 }
 0x258   :  { %1701 = vtanh.f32 %v616_v53 }
 0x259   :  { %1703 = vtanh.f32 %v627_v44 }
 0x260   :  { %v1698_v56 = vpop.eup %1697 }
 0x261   :  { %v1700_v58 = vpop.eup %1699  ;;  %v620_v59 = vmul.f32 0.5, %v1698_v56 }
 0x262   :  { %v624_v60 = vmul.f32 0.5, %v1700_v58  ;;  %v1702_v63 = vpop.eup %1701 }
 0x263   :  { %v621_v61 = vadd.f32 0.5, %v620_v59  ;;  %v1704_v39 = vpop.eup %1703 }
 0x264   :  { %v625_v1 = vadd.f32 0.5, %v624_v60  ;;  %v629_v41 = vmul.f32 0.5, %v1704_v39 }
 0x265   :  { %v635_v5 = vmul.f32 %v1702_v63, %v621_v61 }
 0x266   :  { %v634_v6 = vmul.f32 %v632_v3, %v625_v1  ;;  %v630_v42 = vadd.f32 0.5, %v629_v41 }
 0x268   :  { %v2255_v40 = vadd.f32 %v635_v5, %v634_v6 }
 0x26a   :  { %1705 = vtanh.f32 %v2255_v40 }
 0x274   :  { %v1706_v45 = vpop.eup %1705 }
 0x275   :  { %v2258_v46 = vmul.f32 %v1706_v45, %v630_v42 }
 0x277   :  { %v639_v47 = vpack.c.bf16 %v2258_v46, %v2258_v46 }
 0x279   :  { %v641_v48 = vshrl.u32 %v639_v47, 16 }
 0x27b   :  { %677 = vmatmul.mubr.bf16.vlgmr.msra.gmra.mrb[8].mxu0 %v641_v48  ;;  %718 = vmatmul.mubr.bf16.vlgmr.msra.gmra.mrb[16].mxu1 %v641_v48 }
 0x27c   :  { %768 = vmatpush1.bf16.msra.mxu0 %v2061_v4  ;;  %809 = vmatpush1.bf16.msra.mxu1 %v2083_v15 }
 0x27d   :  { %769 = vmatprep.subr.bf16.mxu0 %v2065_v9  ;;  %810 = vmatprep.subr.bf16.mxu1 %v2088_v17 }
 0x27e   :  { %799 = vmatprep.mubr.bf16.mxu0 %v1952_v0  ;;  %840 = vmatprep.mubr.bf16.mxu1 %v1952_v0 }
 0x280   :  { %770 = vmatpush1.bf16.msra.mxu0 %v2067_v10  ;;  %811 = vmatpush1.bf16.msra.mxu1 %v2094_v19 }
 0x281   :  { %771 = vmatprep.subr.bf16.mxu0 %v2069_v11  ;;  %812 = vmatprep.subr.bf16.mxu1 %v2102_v21 }
 0x284   :  { %772 = vmatpush1.bf16.msra.mxu0 %v2076_v13  ;;  %813 = vmatpush1.bf16.msra.mxu1 %v2107_v23 }
 0x285   :  { %773 = vmatprep.subr.bf16.mxu0 %v2080_v14  ;;  %814 = vmatprep.subr.bf16.mxu1 %v2115_v25 }
 0x288   :  { %774 = vmatpush1.bf16.msra.mxu0 %v2085_v16  ;;  %815 = vmatpush1.bf16.msra.mxu1 %v2119_v27 }
 0x289   :  { %775 = vmatprep.subr.bf16.mxu0 %v2091_v18  ;;  %816 = vmatprep.subr.bf16.mxu1 %v2125_v29 }
 0x28c   :  { %776 = vmatpush1.bf16.msra.mxu0 %v2098_v20  ;;  %817 = vmatpush1.bf16.msra.mxu1 %v2131_v31 }
 0x28d   :  { %777 = vmatprep.subr.bf16.mxu0 %v2104_v22  ;;  %818 = vmatprep.subr.bf16.mxu1 %v2135_v33 }
 0x290   :  { %778 = vmatpush1.bf16.msra.mxu0 %v2111_v24  ;;  %819 = vmatpush1.bf16.msra.mxu1 %v2143_v34 }
 0x291   :  { %779 = vmatprep.subr.bf16.mxu0 %v2117_v26  ;;  %820 = vmatprep.subr.bf16.mxu1 %v2146_v35 }
 0x294   :  { %780 = vmatpush1.bf16.msra.mxu0 %v2121_v28  ;;  %821 = vmatpush1.bf16.msra.mxu1 %v2151_v36 }
 0x295   :  { %781 = vmatprep.subr.bf16.mxu0 %v2127_v30  ;;  %822 = vmatprep.subr.bf16.mxu1 %v2155_v37 }
 0x298   :  { %782 = vmatpush1.bf16.msra.mxu0 %v2133_v32  ;;  %823 = vmatpush1.bf16.msra.mxu1 %v2160_v38 }
 0x299   :  { %892 = vmatprep.subr.bf16.mxu0 %v2059_v2  ;;  %933 = vmatprep.subr.bf16.mxu1 %v2073_v12 }
 0x34e   :  { %v678_v57 = vpop.f32.mrb[8].mxu0  ;;  %v719_v49 = vpop.f32.mrb[16].mxu1 }
 0x34f   :  { %v730_v51 = vrot.slane %v678_v57, 6  ;;  %v680_v52 = vpop.f32.mrb[9].mxu0  ;;  %v721_v53 = vpop.f32.mrb[17].mxu1  ;;  %v732_v58 = vrot.slane %v719_v49, 6 }
 0x350   :  { %v731_v43 = vrot.slane %v680_v52, 6  ;;  %v682_v50 = vpop.f32.mrb[10].mxu0  ;;  %v723_v44 = vpop.f32.mrb[18].mxu1  ;;  %v733_v5 = vrot.slane %v721_v53, 6 }
 0x351   :  { %v738_v56 = vadd.f32 %v730_v51, %v2197_v54  ;;  %v683_v59 = vpop.f32.mrb[11].mxu0  ;;  %v724_v60 = vpop.f32.mrb[19].mxu1  ;;  %v740_v3 = vadd.f32 %v732_v58, %v2203_v7  ;;  %v756_v51 = vrot.slane %v2255_v40, 7 }
 0x352   :  { %v739_v61 = vadd.f32 %v731_v43, %v2199_v55  ;;  %v741_v6 = vadd.f32 %v733_v5, %v2205_v8  ;;  %v1383_v60 = vsel %vm1382_vm1, %v2212_v62, %v2258_v46 }
 0x353   :  { %v742_v63 = vmul.f32 0.5, %v738_v56 }
 0x354   :  { %v746_v1 = vmul.f32 0.5, %v739_v61  ;;  %v751_v39 = vmul.f32 0.5, %v741_v6 }
 0x355   :  { %1707 = vtanh.f32 %v742_v63 }
 0x356   :  { %1709 = vtanh.f32 %v746_v1 }
 0x357   :  { %1711 = vtanh.f32 %v740_v3 }
 0x358   :  { %1713 = vtanh.f32 %v751_v39 }
 0x35f   :  { %v1708_v41 = vpop.eup %1707 }
 0x360   :  { %v1710_v42 = vpop.eup %1709  ;;  %v744_v45 = vmul.f32 0.5, %v1708_v41 }
 0x361   :  { %v748_v47 = vmul.f32 0.5, %v1710_v42  ;;  %v1712_v57 = vpop.eup %1711 }
 0x362   :  { %v745_v48 = vadd.f32 0.5, %v744_v45  ;;  %v1714_v53 = vpop.eup %1713 }
 0x363   :  { %v749_v49 = vadd.f32 0.5, %v748_v47  ;;  %v753_v44 = vmul.f32 0.5, %v1714_v53 }
 0x364   :  { %v759_v52 = vmul.f32 %v1712_v57, %v745_v48 }
 0x365   :  { %v758_v43 = vmul.f32 %v756_v51, %v749_v49  ;;  %v754_v56 = vadd.f32 0.5, %v753_v44 }
 0x367   :  { %v2301_v50 = vadd.f32 %v759_v52, %v758_v43 }
 0x369   :  { %1715 = vtanh.f32 %v2301_v50 }
 0x373   :  { %v1716_v58 = vpop.eup %1715 }
 0x374   :  { %v762_v59 = vmul.f32 %v1716_v58, %v754_v56 }
 0x376   :  { %v2306_v61 = vsel %vm1384_vm2, %v1383_v60, %v762_v59  ;;  %v763_v63 = vpack.c.bf16 %v762_v59, %v762_v59 }
 0x378   :  { %v765_v40 = vrot.slane %v763_v63, 1 }
 0x37a   :  { %800 = vmatmul.mubr.bf16.vlgmr.msra.gmra.mrb[12].mxu0 %v765_v40  ;;  %841 = vmatmul.mubr.bf16.vlgmr.msra.gmra.mrb[20].mxu1 %v765_v40 }
 0x37b   :  { %893 = vmatpush1.bf16.msra.mxu0 %v2061_v4  ;;  %934 = vmatpush1.bf16.msra.mxu1 %v2083_v15 }
 0x37c   :  { %894 = vmatprep.subr.bf16.mxu0 %v2065_v9  ;;  %935 = vmatprep.subr.bf16.mxu1 %v2088_v17 }
 0x37d   :  { %924 = vmatprep.mubr.bf16.mxu0 %v1952_v0  ;;  %965 = vmatprep.mubr.bf16.mxu1 %v1952_v0 }
 0x37f   :  { %895 = vmatpush1.bf16.msra.mxu0 %v2067_v10  ;;  %936 = vmatpush1.bf16.msra.mxu1 %v2094_v19 }
 0x380   :  { %896 = vmatprep.subr.bf16.mxu0 %v2069_v11  ;;  %937 = vmatprep.subr.bf16.mxu1 %v2102_v21 }
 0x383   :  { %897 = vmatpush1.bf16.msra.mxu0 %v2076_v13  ;;  %938 = vmatpush1.bf16.msra.mxu1 %v2107_v23 }
 0x384   :  { %898 = vmatprep.subr.bf16.mxu0 %v2080_v14  ;;  %939 = vmatprep.subr.bf16.mxu1 %v2115_v25 }
 0x387   :  { %899 = vmatpush1.bf16.msra.mxu0 %v2085_v16  ;;  %940 = vmatpush1.bf16.msra.mxu1 %v2119_v27 }
 0x388   :  { %900 = vmatprep.subr.bf16.mxu0 %v2091_v18  ;;  %941 = vmatprep.subr.bf16.mxu1 %v2125_v29 }
 0x38b   :  { %901 = vmatpush1.bf16.msra.mxu0 %v2098_v20  ;;  %942 = vmatpush1.bf16.msra.mxu1 %v2131_v31 }
 0x38c   :  { %902 = vmatprep.subr.bf16.mxu0 %v2104_v22  ;;  %943 = vmatprep.subr.bf16.mxu1 %v2135_v33 }
 0x38f   :  { %903 = vmatpush1.bf16.msra.mxu0 %v2111_v24  ;;  %944 = vmatpush1.bf16.msra.mxu1 %v2143_v34 }
 0x390   :  { %904 = vmatprep.subr.bf16.mxu0 %v2117_v26  ;;  %945 = vmatprep.subr.bf16.mxu1 %v2146_v35 }
 0x393   :  { %905 = vmatpush1.bf16.msra.mxu0 %v2121_v28  ;;  %946 = vmatpush1.bf16.msra.mxu1 %v2151_v36 }
 0x394   :  { %906 = vmatprep.subr.bf16.mxu0 %v2127_v30  ;;  %947 = vmatprep.subr.bf16.mxu1 %v2155_v37 }
 0x397   :  { %907 = vmatpush1.bf16.msra.mxu0 %v2133_v32  ;;  %948 = vmatpush1.bf16.msra.mxu1 %v2160_v38 }
 0x398   :  { %1015 = vmatprep.subr.bf16.mxu0 %v2059_v2  ;;  %1056 = vmatprep.subr.bf16.mxu1 %v2073_v12 }
 0x44d   :  { %v801_v62 = vpop.f32.mrb[12].mxu0  ;;  %v842_v46 = vpop.f32.mrb[20].mxu1 }
 0x44e   :  { %v853_v1 = vrot.slane %v801_v62, 5  ;;  %v803_v3 = vpop.f32.mrb[13].mxu0  ;;  %v844_v5 = vpop.f32.mrb[21].mxu1  ;;  %v855_v45 = vrot.slane %v842_v46, 5  ;;  %v879_v46 = vrot.slane %v2301_v50, 7 }
 0x44f   :  { %v854_v6 = vrot.slane %v803_v3, 5  ;;  %v805_v39 = vpop.f32.mrb[14].mxu0  ;;  %v846_v41 = vpop.f32.mrb[22].mxu1  ;;  %v856_v43 = vrot.slane %v844_v5, 5 }
 0x450   :  { %v861_v42 = vadd.f32 %v853_v1, %v2197_v54  ;;  %v806_v47 = vpop.f32.mrb[15].mxu0  ;;  %v847_v48 = vpop.f32.mrb[23].mxu1  ;;  %v863_v52 = vadd.f32 %v855_v45, %v2203_v7 }
 0x451   :  { %v862_v57 = vadd.f32 %v854_v6, %v2199_v55  ;;  %v864_v53 = vadd.f32 %v856_v43, %v2205_v8 }
 0x452   :  { %v865_v49 = vmul.f32 0.5, %v861_v42 }
 0x453   :  { %v869_v51 = vmul.f32 0.5, %v862_v57  ;;  %v874_v44 = vmul.f32 0.5, %v864_v53 }
 0x454   :  { %1717 = vtanh.f32 %v865_v49 }
 0x455   :  { %1719 = vtanh.f32 %v869_v51 }
 0x456   :  { %1721 = vtanh.f32 %v863_v52 }
 0x457   :  { %1723 = vtanh.f32 %v874_v44 }
 0x45e   :  { %v1718_v56 = vpop.eup %1717 }
 0x45f   :  { %v1720_v58 = vpop.eup %1719  ;;  %v867_v59 = vmul.f32 0.5, %v1718_v56 }
 0x460   :  { %v871_v60 = vmul.f32 0.5, %v1720_v58  ;;  %v1722_v40 = vpop.eup %1721 }
 0x461   :  { %v868_v63 = vadd.f32 0.5, %v867_v59  ;;  %v1724_v5 = vpop.eup %1723 }
 0x462   :  { %v872_v62 = vadd.f32 0.5, %v871_v60  ;;  %v876_v39 = vmul.f32 0.5, %v1724_v5 }
 0x463   :  { %v882_v1 = vmul.f32 %v1722_v40, %v868_v63 }
 0x464   :  { %v881_v3 = vmul.f32 %v879_v46, %v872_v62  ;;  %v877_v41 = vadd.f32 0.5, %v876_v39 }
 0x466   :  { %v2347_v6 = vadd.f32 %v882_v1, %v881_v3 }
 0x468   :  { %1725 = vtanh.f32 %v2347_v6  ;;  %v1004_v3 = vrot.slane %v2347_v6, 7  ;;  %v2398_v6 = vld [vmem:[#allocation7] ss:$16 sps:$4 sm:$0xff]  }
 0x472   :  { %v1726_v42 = vpop.eup %1725 }
 0x473   :  { %v885_v45 = vmul.f32 %v1726_v42, %v877_v41 }
 0x475   :  { %v2351_v47 = vsel %vm1386_vm3, %v2306_v61, %v885_v45  ;;  %v886_v48 = vpack.c.bf16 %v885_v45, %v885_v45 }
 0x477   :  { %v888_v57 = vshrl.u32 %v886_v48, 16 }
 0x479   :  { %v890_v49 = vrot.slane %v888_v57, 1 }
 0x47b   :  { %925 = vmatmul.mubr.bf16.vlgmr.msra.gmra.mrb[16].mxu0 %v890_v49  ;;  %966 = vmatmul.mubr.bf16.vlgmr.msra.gmra.mrb[24].mxu1 %v890_v49 }
 0x47c   :  { %1016 = vmatpush1.bf16.msra.mxu0 %v2061_v4  ;;  %1057 = vmatpush1.bf16.msra.mxu1 %v2083_v15 }
 0x47d   :  { %1017 = vmatprep.subr.bf16.mxu0 %v2065_v9  ;;  %1058 = vmatprep.subr.bf16.mxu1 %v2088_v17 }
 0x47e   :  { %1047 = vmatprep.mubr.bf16.mxu0 %v1952_v0  ;;  %1088 = vmatprep.mubr.bf16.mxu1 %v1952_v0 }
 0x480   :  { %1018 = vmatpush1.bf16.msra.mxu0 %v2067_v10  ;;  %1059 = vmatpush1.bf16.msra.mxu1 %v2094_v19 }
 0x481   :  { %1019 = vmatprep.subr.bf16.mxu0 %v2069_v11  ;;  %1060 = vmatprep.subr.bf16.mxu1 %v2102_v21 }
 0x484   :  { %1020 = vmatpush1.bf16.msra.mxu0 %v2076_v13  ;;  %1061 = vmatpush1.bf16.msra.mxu1 %v2107_v23 }
 0x485   :  { %1021 = vmatprep.subr.bf16.mxu0 %v2080_v14  ;;  %1062 = vmatprep.subr.bf16.mxu1 %v2115_v25 }
 0x488   :  { %1022 = vmatpush1.bf16.msra.mxu0 %v2085_v16  ;;  %1063 = vmatpush1.bf16.msra.mxu1 %v2119_v27 }
 0x489   :  { %1023 = vmatprep.subr.bf16.mxu0 %v2091_v18  ;;  %1064 = vmatprep.subr.bf16.mxu1 %v2125_v29 }
 0x48c   :  { %1024 = vmatpush1.bf16.msra.mxu0 %v2098_v20  ;;  %1065 = vmatpush1.bf16.msra.mxu1 %v2131_v31 }
 0x48d   :  { %1025 = vmatprep.subr.bf16.mxu0 %v2104_v22  ;;  %1066 = vmatprep.subr.bf16.mxu1 %v2135_v33 }
 0x490   :  { %1026 = vmatpush1.bf16.msra.mxu0 %v2111_v24  ;;  %1067 = vmatpush1.bf16.msra.mxu1 %v2143_v34 }
 0x491   :  { %1027 = vmatprep.subr.bf16.mxu0 %v2117_v26  ;;  %1068 = vmatprep.subr.bf16.mxu1 %v2146_v35 }
 0x494   :  { %1028 = vmatpush1.bf16.msra.mxu0 %v2121_v28  ;;  %1069 = vmatpush1.bf16.msra.mxu1 %v2151_v36 }
 0x495   :  { %1029 = vmatprep.subr.bf16.mxu0 %v2127_v30  ;;  %1070 = vmatprep.subr.bf16.mxu1 %v2155_v37 }
 0x498   :  { %1030 = vmatpush1.bf16.msra.mxu0 %v2133_v32  ;;  %1071 = vmatpush1.bf16.msra.mxu1 %v2160_v38 }
 0x499   :  { %1140 = vmatprep.subr.bf16.mxu0 %v2059_v2  ;;  %1181 = vmatprep.subr.bf16.mxu1 %v2073_v12 }
 0x54e   :  { %v926_v4 = vpop.f32.mrb[16].mxu0  ;;  %v967_v9 = vpop.f32.mrb[24].mxu1 }
 0x54f   :  { %v978_v10 = vrot.slane %v926_v4, 4  ;;  %v928_v11 = vpop.f32.mrb[17].mxu0  ;;  %v969_v13 = vpop.f32.mrb[25].mxu1  ;;  %v980_v61 = vrot.slane %v967_v9, 4 }
 0x550   :  { %v979_v14 = vrot.slane %v928_v11, 4  ;;  %v930_v16 = vpop.f32.mrb[18].mxu0  ;;  %v971_v18 = vpop.f32.mrb[26].mxu1  ;;  %v981_v12 = vrot.slane %v969_v13, 4  ;;  %v2402_v11 = vld [vmem:[#allocation7 + $0x24] ss:$16 sps:$4 sm:$0xff]  }
 0x551   :  { %v986_v50 = vadd.f32 %v978_v10, %v2197_v54  ;;  %v931_v51 = vpop.f32.mrb[19].mxu0  ;;  %v972_v52 = vpop.f32.mrb[27].mxu1  ;;  %v988_v2 = vadd.f32 %v980_v61, %v2203_v7  ;;  %v2412_v13 = vld [vmem:[#allocation7 + $0x44] ss:$16 sps:$4 sm:$0xff]  }
 0x552   :  { %v987_v43 = vadd.f32 %v979_v14, %v2199_v55  ;;  %v989_v56 = vadd.f32 %v981_v12, %v2205_v8  ;;  %v2424_v14 = vld [vmem:[#allocation7 + $0x60] ss:$16 sps:$4 sm:$0xff]  }
 0x553   :  { %v990_v53 = vmul.f32 0.5, %v986_v50 }
 0x554   :  { %v994_v44 = vmul.f32 0.5, %v987_v43  ;;  %v999_v58 = vmul.f32 0.5, %v989_v56 }
 0x555   :  { %1727 = vtanh.f32 %v990_v53 }
 0x556   :  { %1729 = vtanh.f32 %v994_v44 }
 0x557   :  { %1731 = vtanh.f32 %v988_v2 }
 0x558   :  { %1733 = vtanh.f32 %v999_v58 }
 0x55f   :  { %v1728_v59 = vpop.eup %1727 }
 0x560   :  { %v1730_v60 = vpop.eup %1729  ;;  %v992_v63 = vmul.f32 0.5, %v1728_v59 }
 0x561   :  { %v996_v40 = vmul.f32 0.5, %v1730_v60  ;;  %v1732_v46 = vpop.eup %1731 }
 0x562   :  { %v993_v62 = vadd.f32 0.5, %v992_v63  ;;  %v1734_v42 = vpop.eup %1733 }
 0x563   :  { %v997_v1 = vadd.f32 0.5, %v996_v40  ;;  %v1001_v45 = vmul.f32 0.5, %v1734_v42  ;;  %v1783_v42 = vld [vmem:[#allocation7 + $0x28] ss:$16 sps:$4 sm:$0xff]  }
 0x564   :  { %v1007_v5 = vmul.f32 %v1732_v46, %v993_v62 }
 0x565   :  { %v1006_v39 = vmul.f32 %v1004_v3, %v997_v1  ;;  %v1002_v48 = vadd.f32 0.5, %v1001_v45  ;;  %v1784_v45 = vld [vmem:[#allocation7 + $0x4c] ss:$16 sps:$4 sm:$0xff]  }
 0x567   :  { %v2392_v41 = vadd.f32 %v1007_v5, %v1006_v39  ;;  %v1781_v39 = vld [vmem:[#allocation7 + $0x8] ss:$16 sps:$4 sm:$0xff]  }
 0x569   :  { %1735 = vtanh.f32 %v2392_v41  ;;  %v1127_v2 = vrot.slane %v2392_v41, 7  ;;  %v1782_v41 = vld [vmem:[#allocation7 + $0x2c] ss:$16 sps:$4 sm:$0xff]  }
 0x573   :  { %v1736_v57 = vpop.eup %1735 }
 0x574   :  { %v1010_v49 = vmul.f32 %v1736_v57, %v1002_v48  ;;  %v1785_v48 = vld [vmem:[#allocation7 + $0x48] ss:$16 sps:$4 sm:$0xff]   ;;  %v1786_v57 = vld [vmem:[#allocation7 + $0x6c] ss:$16 sps:$4 sm:$0xff]  }
 0x576   :  { %v2396_v4 = vsel %vm1388_vm4, %v2351_v47, %v1010_v49  ;;  %v1011_v9 = vpack.c.bf16 %v1010_v49, %v1010_v49  ;;  %v2408_v47 = vld [vmem:[#allocation7 + $0x20] ss:$16 sps:$4 sm:$0xff]   ;;  %v1787_v49 = vld [vmem:[#allocation7 + $0x68] ss:$16 sps:$4 sm:$0xff]  }
 0x578   :  { %v1013_v10 = vrot.slane %v1011_v9, 2  ;;  %v1790_v9 = vld [vmem:[#allocation7 + $0x88] ss:$16 sps:$4 sm:$0xff]  }
 0x57a   :  { %1048 = vmatmul.mubr.bf16.vlgmr.msra.gmra.mrb[20].mxu0 %v1013_v10  ;;  %1089 = vmatmul.mubr.bf16.vlgmr.msra.gmra.mrb[28].mxu1 %v1013_v10  ;;  %v1791_v10 = vld [vmem:[#allocation7 + $0xa4] ss:$16 sps:$4 sm:$0xff]  }
 0x57b   :  { %1141 = vmatpush1.bf16.msra.mxu0 %v2398_v6  ;;  %1182 = vmatpush1.bf16.msra.mxu1 %v2083_v15  ;;  %v2416_v15 = vld [vmem:[#allocation7 + $0x40] ss:$16 sps:$4 sm:$0xff]  }
 0x57c   :  { %1142 = vmatprep.subr.bf16.mxu0 %v2402_v11  ;;  %1183 = vmatprep.subr.bf16.mxu1 %v2088_v17  ;;  %v2420_v17 = vld [vmem:[#allocation7 + $0x64] ss:$16 sps:$4 sm:$0xff]  }
 0x57d   :  { %1172 = vmatprep.mubr.bf16.mxu0 %v1952_v0  ;;  %1213 = vmatprep.mubr.bf16.mxu1 %v1952_v0 }
 0x57f   :  { %1143 = vmatpush1.bf16.msra.mxu0 %v2408_v47  ;;  %1184 = vmatpush1.bf16.msra.mxu1 %v2094_v19  ;;  %v2428_v19 = vld [vmem:[#allocation7 + $0x84] ss:$16 sps:$4 sm:$0xff]  }
 0x580   :  { %1144 = vmatprep.subr.bf16.mxu0 %v2412_v13  ;;  %1185 = vmatprep.subr.bf16.mxu1 %v2102_v21  ;;  %v1780_v21 = vld [vmem:[#allocation7 + $0xc] ss:$16 sps:$4 sm:$0xff]  }
 0x583   :  { %1145 = vmatpush1.bf16.msra.mxu0 %v2416_v15  ;;  %1186 = vmatpush1.bf16.msra.mxu1 %v2107_v23 }
 0x584   :  { %1146 = vmatprep.subr.bf16.mxu0 %v2420_v17  ;;  %1187 = vmatprep.subr.bf16.mxu1 %v2115_v25 }
 0x587   :  { %1147 = vmatpush1.bf16.msra.mxu0 %v2424_v14  ;;  %1188 = vmatpush1.bf16.msra.mxu1 %v2119_v27 }
 0x588   :  { %1148 = vmatprep.subr.bf16.mxu0 %v2428_v19  ;;  %1189 = vmatprep.subr.bf16.mxu1 %v2125_v29 }
 0x58b   :  { %1149 = vmatpush1.bf16.msra.mxu0 %v2098_v20  ;;  %1190 = vmatpush1.bf16.msra.mxu1 %v2131_v31  ;;  %v1779_v20 = vld [vmem:[#allocation7 + $0x4] ss:$16 sps:$4 sm:$0xff]  }
 0x58c   :  { %1150 = vmatprep.subr.bf16.mxu0 %v2104_v22  ;;  %1191 = vmatprep.subr.bf16.mxu1 %v2135_v33 }
 0x58f   :  { %1151 = vmatpush1.bf16.msra.mxu0 %v2111_v24  ;;  %1192 = vmatpush1.bf16.msra.mxu1 %v2143_v34 }
 0x590   :  { %1152 = vmatprep.subr.bf16.mxu0 %v2117_v26  ;;  %1193 = vmatprep.subr.bf16.mxu1 %v2146_v35 }
 0x593   :  { %1153 = vmatpush1.bf16.msra.mxu0 %v2121_v28  ;;  %1194 = vmatpush1.bf16.msra.mxu1 %v2151_v36 }
 0x594   :  { %1154 = vmatprep.subr.bf16.mxu0 %v2127_v30  ;;  %1195 = vmatprep.subr.bf16.mxu1 %v2155_v37 }
 0x597   :  { %1155 = vmatpush1.bf16.msra.mxu0 %v2133_v32  ;;  %1196 = vmatpush1.bf16.msra.mxu1 %v2160_v38 }
 0x598   :  { %1263 = vmatprep.subr.bf16.mxu0 %v1779_v20  ;;  %1304 = vmatprep.subr.bf16.mxu1 %v1780_v21  ;;  %v1800_v20 = vld [vmem:[#allocation7 + $0xec] ss:$16 sps:$4 sm:$0xff]   ;;  %v1801_v21 = vld [vmem:[#allocation7 + $0xe0] ss:$16 sps:$4 sm:$0xff]  }
 0x64d   :  { %v1049_v22 = vpop.f32.mrb[20].mxu0  ;;  %v1090_v23 = vpop.f32.mrb[28].mxu1 }
 0x64e   :  { %v1101_v24 = vrot.slane %v1049_v22, 3  ;;  %v1051_v25 = vpop.f32.mrb[21].mxu0  ;;  %v1092_v26 = vpop.f32.mrb[29].mxu1  ;;  %v1103_v31 = vrot.slane %v1090_v23, 3  ;;  %v1802_v22 = vld [vmem:[#allocation7 + $0xe8] ss:$16 sps:$4 sm:$0xff]  }
 0x64f   :  { %v1102_v27 = vrot.slane %v1051_v25, 3  ;;  %v1053_v28 = vpop.f32.mrb[22].mxu0  ;;  %v1094_v29 = vpop.f32.mrb[30].mxu1  ;;  %v1104_v38 = vrot.slane %v1092_v26, 3 }
 0x650   :  { %v1109_v30 = vadd.f32 %v1101_v24, %v2197_v54  ;;  %v1054_v33 = vpop.f32.mrb[23].mxu0  ;;  %v1095_v34 = vpop.f32.mrb[31].mxu1  ;;  %v1111_v37 = vadd.f32 %v1103_v31, %v2203_v7 }
 0x651   :  { %v1110_v32 = vadd.f32 %v1102_v27, %v2199_v55  ;;  %v1112_v16 = vadd.f32 %v1104_v38, %v2205_v8 }
 0x652   :  { %v1113_v35 = vmul.f32 0.5, %v1109_v30 }
 0x653   :  { %v1117_v36 = vmul.f32 0.5, %v1110_v32  ;;  %v1122_v18 = vmul.f32 0.5, %v1112_v16 }
 0x654   :  { %1737 = vtanh.f32 %v1113_v35 }
 0x655   :  { %1739 = vtanh.f32 %v1117_v36 }
 0x656   :  { %1741 = vtanh.f32 %v1111_v37 }
 0x657   :  { %1743 = vtanh.f32 %v1122_v18 }
 0x65e   :  { %v1738_v50 = vpop.eup %1737 }
 0x65f   :  { %v1740_v61 = vpop.eup %1739  ;;  %v1115_v51 = vmul.f32 0.5, %v1738_v50 }
 0x660   :  { %v1119_v52 = vmul.f32 0.5, %v1740_v61  ;;  %v1742_v53 = vpop.eup %1741 }
 0x661   :  { %v1116_v43 = vadd.f32 0.5, %v1115_v51  ;;  %v1744_v59 = vpop.eup %1743 }
 0x662   :  { %v1120_v44 = vadd.f32 0.5, %v1119_v52  ;;  %v1124_v60 = vmul.f32 0.5, %v1744_v59 }
 0x663   :  { %v1130_v12 = vmul.f32 %v1742_v53, %v1116_v43 }
 0x664   :  { %v1129_v56 = vmul.f32 %v1127_v2, %v1120_v44  ;;  %v1125_v63 = vadd.f32 0.5, %v1124_v60 }
 0x666   :  { %v2451_v58 = vadd.f32 %v1130_v12, %v1129_v56 }
 0x668   :  { %1745 = vtanh.f32 %v2451_v58  ;;  %v1252_v12 = vrot.slane %v2451_v58, 7  ;;  %v1679_v58 = vld [vmem:[#allocation10] sm:$0xff]  }
 0x672   :  { %v1746_v40 = vpop.eup %1745 }
 0x673   :  { %v1133_v62 = vmul.f32 %v1746_v40, %v1125_v63 }
 0x675   :  { %v1134_v46 = vpack.c.bf16 %v1133_v62, %v1133_v62  ;;  %v2455_v1 = vsel %vm1390_vm5, %v2396_v4, %v1133_v62  ;;  %v1789_v4 = vld [vmem:[#allocation7 + $0x80] ss:$16 sps:$4 sm:$0xff]  }
 0x677   :  { %v1136_v3 = vshrl.u32 %v1134_v46, 16 }
 0x679   :  { %v1138_v5 = vrot.slane %v1136_v3, 2 }
 0x67b   :  { %1173 = vmatmul.mubr.bf16.vlgmr.msra.gmra.mrb[24].mxu0 %v1138_v5  ;;  %1214 = vmatmul.mubr.bf16.vlgmr.msra.gmra.mrb[32].mxu1 %v1138_v5 }
 0x67c   :  { %1264 = vmatpush1.bf16.msra.mxu0 %v2398_v6  ;;  %1305 = vmatpush1.bf16.msra.mxu1 %v1781_v39  ;;  %v1792_v6 = vld [vmem:[#allocation7 + $0xac] ss:$16 sps:$4 sm:$0xff]  }
 0x67d   :  { %1265 = vmatprep.subr.bf16.mxu0 %v2402_v11  ;;  %1306 = vmatprep.subr.bf16.mxu1 %v1782_v41  ;;  %v1793_v11 = vld [vmem:[#allocation7 + $0xa0] ss:$16 sps:$4 sm:$0xff]  }
 0x67e   :  { %1295 = vmatprep.mubr.bf16.mxu0 %v1952_v0  ;;  %1336 = vmatprep.mubr.bf16.mxu1 %v1952_v0  ;;  %v1788_v0 = vld [vmem:[#allocation7 + $0x8c] ss:$16 sps:$4 sm:$0xff]  }
 0x680   :  { %1266 = vmatpush1.bf16.msra.mxu0 %v2408_v47  ;;  %1307 = vmatpush1.bf16.msra.mxu1 %v1783_v42  ;;  %v1794_v47 = vld [vmem:[#allocation7 + $0xa8] ss:$16 sps:$4 sm:$0xff]   ;;  %v1953_v42 = vmov 0.0  }
 0x681   :  { %1267 = vmatprep.subr.bf16.mxu0 %v2412_v13  ;;  %1308 = vmatprep.subr.bf16.mxu1 %v1784_v45  ;;  %v1795_v13 = vld [vmem:[#allocation7 + $0xc4] ss:$16 sps:$4 sm:$0xff]   ;;  %v1680_v45 = vld [vmem:[#allocation10 + $0x8] sm:$0xff]  }
 0x684   :  { %1268 = vmatpush1.bf16.msra.mxu0 %v2416_v15  ;;  %1309 = vmatpush1.bf16.msra.mxu1 %v1785_v48  ;;  %v1796_v15 = vld [vmem:[#allocation7 + $0xcc] ss:$16 sps:$4 sm:$0xff]   ;;  %v1681_v48 = vld [vmem:[#allocation10 + $0x10] sm:$0xff]  }
 0x685   :  { %1269 = vmatprep.subr.bf16.mxu0 %v2420_v17  ;;  %1310 = vmatprep.subr.bf16.mxu1 %v1786_v57  ;;  %v1797_v17 = vld [vmem:[#allocation7 + $0xc0] ss:$16 sps:$4 sm:$0xff]  }
 0x686   :  { %v1682_v57 = vld [vmem:[#allocation10 + $0x18] sm:$0xff]  }
 0x688   :  { %1270 = vmatpush1.bf16.msra.mxu0 %v2424_v14  ;;  %1311 = vmatpush1.bf16.msra.mxu1 %v1787_v49  ;;  %v1798_v14 = vld [vmem:[#allocation7 + $0xc8] ss:$16 sps:$4 sm:$0xff]  }
 0x689   :  { %1271 = vmatprep.subr.bf16.mxu0 %v2428_v19  ;;  %1312 = vmatprep.subr.bf16.mxu1 %v1788_v0  ;;  %v1799_v19 = vld [vmem:[#allocation7 + $0xe4] ss:$16 sps:$4 sm:$0xff]  }
 0x68a   :  { %v1683_v49 = vld [vmem:[#allocation10 + $0x20] sm:$0xff]   ;;  %v1685_v0 = vld [vmem:[#allocation10 + $0x30] sm:$0xff]  }
 0x68c   :  { %1272 = vmatpush1.bf16.msra.mxu0 %v1789_v4  ;;  %1313 = vmatpush1.bf16.msra.mxu1 %v1790_v9  ;;  %v1686_v4 = vld [vmem:[#allocation10 + $0x38] sm:$0xff]  }
 0x68d   :  { %1273 = vmatprep.subr.bf16.mxu0 %v1791_v10  ;;  %1314 = vmatprep.subr.bf16.mxu1 %v1792_v6 }
 0x690   :  { %1274 = vmatpush1.bf16.msra.mxu0 %v1793_v11  ;;  %1315 = vmatpush1.bf16.msra.mxu1 %v1794_v47 }
 0x691   :  { %1275 = vmatprep.subr.bf16.mxu0 %v1795_v13  ;;  %1316 = vmatprep.subr.bf16.mxu1 %v1796_v15 }
 0x694   :  { %1276 = vmatpush1.bf16.msra.mxu0 %v1797_v17  ;;  %1317 = vmatpush1.bf16.msra.mxu1 %v1798_v14 }
 0x695   :  { %1277 = vmatprep.subr.bf16.mxu0 %v1799_v19  ;;  %1318 = vmatprep.subr.bf16.mxu1 %v1800_v20 }
 0x698   :  { %1278 = vmatpush1.bf16.msra.mxu0 %v1801_v21  ;;  %1319 = vmatpush1.bf16.msra.mxu1 %v1802_v22 }
 0x699   :  { %1592 = vmatprep.subr.bf16.mxu0 %v1953_v42 }
 0x74e   :  { %v1174_v23 = vpop.f32.mrb[24].mxu0  ;;  %v1215_v24 = vpop.f32.mrb[32].mxu1 }
 0x74f   :  { %v1226_v25 = vrot.slane %v1174_v23, 2  ;;  %v1176_v26 = vpop.f32.mrb[25].mxu0  ;;  %v1217_v27 = vpop.f32.mrb[33].mxu1  ;;  %v1228_v33 = vrot.slane %v1215_v24, 2 }
 0x750   :  { %v1227_v28 = vrot.slane %v1176_v26, 2  ;;  %v1178_v29 = vpop.f32.mrb[26].mxu0  ;;  %v1219_v30 = vpop.f32.mrb[34].mxu1  ;;  %v1229_v16 = vrot.slane %v1217_v27, 2 }
 0x751   :  { %v1234_v31 = vadd.f32 %v1226_v25, %v2197_v54  ;;  %v1179_v34 = vpop.f32.mrb[27].mxu0  ;;  %v1220_v32 = vpop.f32.mrb[35].mxu1  ;;  %v1236_v38 = vadd.f32 %v1228_v33, %v2203_v7 }
 0x752   :  { %v1235_v35 = vadd.f32 %v1227_v28, %v2199_v55  ;;  %v1237_v18 = vadd.f32 %v1229_v16, %v2205_v8 }
 0x753   :  { %v1238_v36 = vmul.f32 0.5, %v1234_v31 }
 0x754   :  { %v1242_v37 = vmul.f32 0.5, %v1235_v35  ;;  %v1247_v50 = vmul.f32 0.5, %v1237_v18 }
 0x755   :  { %1747 = vtanh.f32 %v1238_v36 }
 0x756   :  { %1749 = vtanh.f32 %v1242_v37 }
 0x757   :  { %1751 = vtanh.f32 %v1236_v38 }
 0x758   :  { %1753 = vtanh.f32 %v1247_v50 }
 0x75f   :  { %v1748_v61 = vpop.eup %1747 }
 0x760   :  { %v1750_v51 = vpop.eup %1749  ;;  %v1240_v52 = vmul.f32 0.5, %v1748_v61 }
 0x761   :  { %v1244_v43 = vmul.f32 0.5, %v1750_v51  ;;  %v1752_v44 = vpop.eup %1751  ;;  %v1574_v51 = vld [vmem:[%s2504_s5] ss:$0 sm:$0xff]  ;;  %s1913_s5 = scalar_lea.vmem %s1526_s11, 128 }
 0x762   :  { %v1241_v53 = vadd.f32 0.5, %v1240_v52  ;;  %v1754_v63 = vpop.eup %1753  ;;  %p1914_p12 = scmp.ne.s32.totalorder %s1526_s11, %s1913_s5  ;;  %p1919_p0 = scmp.lt.s32.totalorder %s1913_s5, %s1913_s5 }
 0x763   :  { %v1245_v2 = vadd.f32 0.5, %v1244_v43  ;;  %v1249_v40 = vmul.f32 0.5, %v1754_v63 }
 0x764   :  { %v1255_v56 = vmul.f32 %v1752_v44, %v1241_v53  ;;  %p1920_p1 = por %p1919_p0, %p1918_p13 }
 0x765   :  { %v1254_v59 = vmul.f32 %v1252_v12, %v1245_v2  ;;  %v1250_v62 = vadd.f32 0.5, %v1249_v40 }
 0x766   :  { %p1921_p2 = pnand %p1920_p1, %p1914_p12 }
 0x767   :  { %v2472_v60 = vadd.f32 %v1255_v56, %v1254_v59 }
 0x769   :  { %1755 = vtanh.f32 %v2472_v60 }
 0x773   :  { %v1756_v46 = vpop.eup %1755 }
 0x774   :  { %v1258_v3 = vmul.f32 %v1756_v46, %v1250_v62 }
 0x776   :  { %v1259_v5 = vpack.c.bf16 %v1258_v3, %v1258_v3  ;;  %v2476_v39 = vsel %vm1392_vm6, %v2455_v1, %v1258_v3  ;;  %v1684_v1 = vld [vmem:[#allocation10 + $0x28] sm:$0xff]  }
 0x778   :  { %v1261_v41 = vrot.slane %v1259_v5, 3 }
 0x77a   :  { %1296 = vmatmul.mubr.bf16.vlgmr.msra.gmra.mrb[28].mxu0 %v1261_v41  ;;  %1337 = vmatmul.mubr.bf16.vlgmr.msra.gmra.mrb[36].mxu1 %v1261_v41 }
 0x77b   :  { %1593 = vmatpush3.bf16.msra.mxu0 %v1679_v58  ;;  %1608 = vmatprep.mubr.msk.bf16.mxu0 %vm1954_vm7, %v1953_v42 }
 0x77c   :  { %1594 = vmatprep.subr.bf16.mxu0 %v1953_v42 }
 0x77f   :  { %1595 = vmatpush3.bf16.msra.mxu0 %v1680_v45 }
 0x780   :  { %1596 = vmatprep.subr.bf16.mxu0 %v1953_v42 }
 0x783   :  { %1597 = vmatpush3.bf16.msra.mxu0 %v1681_v48 }
 0x784   :  { %1598 = vmatprep.subr.bf16.mxu0 %v1953_v42 }
 0x787   :  { %1599 = vmatpush3.bf16.msra.mxu0 %v1682_v57 }
 0x788   :  { %1600 = vmatprep.subr.bf16.mxu0 %v1953_v42 }
 0x78b   :  { %1601 = vmatpush3.bf16.msra.mxu0 %v1683_v49 }
 0x78c   :  { %1602 = vmatprep.subr.bf16.mxu0 %v1953_v42 }
 0x78f   :  { %1603 = vmatpush3.bf16.msra.mxu0 %v1684_v1 }
 0x790   :  { %1604 = vmatprep.subr.bf16.mxu0 %v1953_v42 }
 0x793   :  { %1605 = vmatpush3.bf16.msra.mxu0 %v1685_v0 }
 0x794   :  { %1606 = vmatprep.subr.bf16.mxu0 %v1953_v42 }
 0x797   :  { %1607 = vmatpush3.bf16.msra.mxu0 %v1686_v4 }
 0x84d   :  { %v1297_v9 = vpop.f32.mrb[28].mxu0  ;;  %v1338_v10 = vpop.f32.mrb[36].mxu1 }
 0x84e   :  { %v1349_v6 = vrot.slane %v1297_v9, 1  ;;  %v1299_v11 = vpop.f32.mrb[29].mxu0  ;;  %v1340_v47 = vpop.f32.mrb[37].mxu1  ;;  %v1351_v19 = vrot.slane %v1338_v10, 1 }
 0x84f   :  { %v1350_v13 = vrot.slane %v1299_v11, 1  ;;  %v1301_v15 = vpop.f32.mrb[30].mxu0  ;;  %v1342_v17 = vpop.f32.mrb[38].mxu1  ;;  %v1352_v26 = vrot.slane %v1340_v47, 1 }
 0x850   :  { %v1357_v14 = vadd.f32 %v1349_v6, %v2197_v54  ;;  %v1302_v20 = vpop.f32.mrb[31].mxu0  ;;  %v1343_v21 = vpop.f32.mrb[39].mxu1  ;;  %v1359_v25 = vadd.f32 %v1351_v19, %v2203_v7 }
 0x851   :  { %v1358_v22 = vadd.f32 %v1350_v13, %v2199_v55  ;;  %v1360_v27 = vadd.f32 %v1352_v26, %v2205_v8  ;;  %v1375_v55 = vrot.slane %v2472_v60, 7 }
 0x852   :  { %v1361_v23 = vmul.f32 0.5, %v1357_v14 }
 0x853   :  { %v1365_v24 = vmul.f32 0.5, %v1358_v22  ;;  %v1370_v28 = vmul.f32 0.5, %v1360_v27 }
 0x854   :  { %1757 = vtanh.f32 %v1361_v23 }
 0x855   :  { %1759 = vtanh.f32 %v1365_v24 }
 0x856   :  { %1761 = vtanh.f32 %v1359_v25 }
 0x857   :  { %1763 = vtanh.f32 %v1370_v28 }
 0x85e   :  { %v1758_v29 = vpop.eup %1757 }
 0x85f   :  { %v1760_v30 = vpop.eup %1759  ;;  %v1363_v31 = vmul.f32 0.5, %v1758_v29 }
 0x860   :  { %v1367_v54 = vmul.f32 0.5, %v1760_v30  ;;  %v1762_v34 = vpop.eup %1761 }
 0x861   :  { %v1364_v33 = vadd.f32 0.5, %v1363_v31  ;;  %v1764_v7 = vpop.eup %1763 }
 0x862   :  { %v1368_v32 = vadd.f32 0.5, %v1367_v54  ;;  %v1372_v38 = vmul.f32 0.5, %v1764_v7 }
 0x863   :  { %v1378_v35 = vmul.f32 %v1762_v34, %v1364_v33 }
 0x864   :  { %v1377_v36 = vmul.f32 %v1375_v55, %v1368_v32  ;;  %v1373_v16 = vadd.f32 0.5, %v1372_v38 }
 0x866   :  { %v1379_v37 = vadd.f32 %v1378_v35, %v1377_v36 }
 0x868   :  { %1765 = vtanh.f32 %v1379_v37 }
 0x872   :  { %v1766_v18 = vpop.eup %1765 }
 0x873   :  { %v1381_v8 = vmul.f32 %v1766_v18, %v1373_v16 }
 0x875   :  { %v1395_v50 = vsel %vm1394_vm8, %v2476_v39, %v1381_v8 }
 0x876   :  { %v1396_v61 = vpack.c.bf16 %v1395_v50, %v1395_v50 }
 0x878   :  { %1609 = vmatmul.mubr.bf16.vlgmr.msra.gmra.mrb[32].mxu0 %v1396_v61 }
 0x94b   :  { %v1502_v52 = vpop.f32.mrb[32].mxu0 }
 0x94c   :  { %v1503_v43 = vadd.f32 %v1574_v51, %v1502_v52  ;;  %v1610_v53 = vpop.f32.mrb[33].mxu0 }
 0x94d   :  { %v1505_v44 = vpop.f32.mrb[34].mxu0 }
 0x94e   :  { %1508 = vmax.xlane.f32.xlu0 %v1503_v43  ;;  %v1611_v2 = vpop.f32.mrb[35].mxu0 }
 0x9db   :  { %v1509_v12 = vpop.xlane.xlu0 %1508 }
 0x9dc   :  { %v1510_v56 = vsub.f32 %v1503_v43, %v1509_v12 }
 0x9de   :  { %v1511_v59 = vmul.f32 1.442695, %v1510_v56 }
 0x9e0   :  { %1767 = vpow2.f32 %v1511_v59 }
 0x9ea   :  { %v1768_v60 = vpop.eup %1767 }
 0x9eb   :  { %1513 = vadd.xlane.f32.xlu0 %v1768_v60 }
 0xa78   :  { %v1514_v63 = vpop.xlane.xlu0 %1513 }
 0xa79   :  { %1769 = vlog2.f32 %v1514_v63 }
 0xa83   :  { %v1770_v40 = vpop.eup %1769 }
 0xa84   :  { %v1516_v62 = vmul.f32 0.6931472, %v1770_v40 }
 0xa86   :  { %v1517_v46 = vsub.f32 %v1510_v56, %v1516_v62 }
 0xa88   :  { %1518 = vst [vmem:[#allocation11] sm:$0xff] %v1517_v46 }
 0xa89   :  { %1924 = shalt.err (!%p1921_p2)
}
 0xa8a   :  { %s1925_s15 = scalar_lea.hbm %s2505_s6, 128 }
 0xa8b   :  { %p1926_p3 = scmp.ne.s32.totalorder %s2505_s6, %s1925_s15  ;;  %p1929_p4 = scmp.lt.u32.totalorder %s1925_s15, %s2505_s6 }
 0xa8d   :  { %p1931_p5 = pnand %p1929_p4, %p1926_p3 }
 0xa8f   :  { %1934 = shalt.err (!%p1931_p5)
}
 0xa90   :  { %1528 = dma.vmem_to_hbm [thread:$0]  %s1526_s11, 128, %s2505_s6, [#allocation4]  }
 0xa91   :  { %1941 = dma.done.wait [#allocation4], 128  }
 0xa92   :  { %1942 = vsyncadd [#allocation4], 4294967168 }
 0xa93   :  { %1532 = vsyncpa [#allocation3], 1 }
 0xa94   :  { %1533 = vsyncpa [#allocation6], 1 }
 0xa95   :  { %1534 = vsyncpa [#allocation9], 1 }
 0xa96   :  { %1535 = vsyncpa [#allocation4], 1 }

</bundles_post_ra>
